<compile_context>
chip_gen: v5e
topology: v5e:2x2
jax: 0.10.0
libtpu: 0.0.40
codegen_flags: <defaults>
</compile_context>

<pallas_src>
import math

import jax
import jax.numpy as jnp
from jax.experimental import pallas as pl
from jax.experimental.pallas import tpu as pltpu

# ----------------------------- model config ---------------------------------
D_MODEL = 32
NHEAD = 4
HEAD_DIM = D_MODEL // NHEAD
DIM_FF = 64
SEQ = 8
BATCH = 2
LN_EPS = 1e-5
NEG_INF = -1e30

R_TOKENS = SEQ * BATCH        # flattened (seq, batch) rows = 16
LANES = 128                   # packed-parameter lane width (one vreg lane extent)

# Row offsets inside the single packed parameter array (all multiples of 8,
# every sub-array starts at lane 0 -> aligned prefix loads only).
ROW_WQKV = 0                          # (D, 3D)  lanes[:96]   q|k|v, q pre-scaled
ROW_WO = ROW_WQKV + D_MODEL           # (D, D)   lanes[:32]   out_proj.weight.T
ROW_W1T = ROW_WO + D_MODEL            # (D, F)   lanes[:64]   linear1.weight.T
ROW_W2T = ROW_W1T + D_MODEL           # (F, D)   lanes[:32]   linear2.weight.T
ROW_VEC = ROW_W2T + DIM_FF            # 8 bias / layernorm rows
PARAM_ROWS = ROW_VEC + 8              # 168 rows total (= 21 sublane tiles)


# ------------------------------ Pallas kernel -------------------------------
def _encoder_layer_kernel(x_ref, p_ref, o_ref):
    D, H, HD, F, R = D_MODEL, NHEAD, HEAD_DIM, DIM_FF, R_TOKENS

    x = x_ref[...]                                              # (R, D) f32

    # Static slices of the packed parameter block (lane-0-aligned prefix loads).
    wqkv = p_ref[ROW_WQKV:ROW_WQKV + D, :3 * D]                 # (D, 3D)
    wo = p_ref[ROW_WO:ROW_WO + D, :D]                           # (D, D)
    w1t = p_ref[ROW_W1T:ROW_W1T + D, :F]                        # (D, F)
    w2t = p_ref[ROW_W2T:ROW_W2T + F, :D]                        # (F, D)
    ln1w = p_ref[ROW_VEC + 0:ROW_VEC + 1, :D]                   # (1, D)
    ln1b = p_ref[ROW_VEC + 1:ROW_VEC + 2, :D]
    ln2w = p_ref[ROW_VEC + 2:ROW_VEC + 3, :D]
    ln2b = p_ref[ROW_VEC + 3:ROW_VEC + 4, :D]
    outb = p_ref[ROW_VEC + 4:ROW_VEC + 5, :D]
    b2 = p_ref[ROW_VEC + 5:ROW_VEC + 6, :D]
    b1 = p_ref[ROW_VEC + 6:ROW_VEC + 7, :F]                     # (1, F)
    bqkv = p_ref[ROW_VEC + 7:ROW_VEC + 8, :3 * D]               # (1, 3D), q pre-scaled

    def layernorm(v, w, b):
        mu = jnp.mean(v, axis=-1, keepdims=True)
        d = v - mu
        var = jnp.mean(d * d, axis=-1, keepdims=True)           # two-pass: safe
        return d * jax.lax.rsqrt(var + LN_EPS) * w + b

    # ---- pre-norm 1 + multi-head self-attention -----------------------------
    src2 = layernorm(x, ln1w, ln1b)                             # (R, D)

    # Single fused QKV projection: (R,32) @ (32,96).
    qkv = jnp.dot(src2, wqkv, preferred_element_type=jnp.float32) + bqkv  # (R, 3D)
    qh = qkv[:, :D].reshape(R, H, HD).transpose(1, 0, 2)        # (H, R, HD), pre-scaled
    kh = qkv[:, D:2 * D].reshape(R, H, HD).transpose(1, 0, 2)   # (H, R, HD)
    vh = qkv[:, 2 * D:3 * D].reshape(R, H, HD).transpose(1, 0, 2)

    # Cross-batch additive mask built in-kernel (row r = s*BATCH + b).
    rx = jax.lax.broadcasted_iota(jnp.int32, (R, R), 0)
    ry = jax.lax.broadcasted_iota(jnp.int32, (R, R), 1)
    bias = jnp.where((rx % BATCH) == (ry % BATCH), 0.0, NEG_INF)  # (R, R)

    scores = jnp.einsum("hxd,hyd->hxy", qh, kh,
                        preferred_element_type=jnp.float32)      # (H, R, R)
    scores = scores + bias[None]
    scores = scores - jnp.max(scores, axis=-1, keepdims=True)
    pattn = jnp.exp(scores)
    # Exact reciprocal keeps tight (1e-4) parity; approx=True moves it to the
    # EUP (free slot) on v6e/v7x if ~1e-3 softmax-denominator error is OK.
    pattn = pattn * pl.reciprocal(jnp.sum(pattn, axis=-1, keepdims=True),
                                  approx=False)

    ctx = jnp.einsum("hxy,hyd->hxd", pattn, vh,
                     preferred_element_type=jnp.float32)         # (H, R, HD)
    ctx = ctx.transpose(1, 0, 2).reshape(R, D)                   # heads packed on lanes

    attn = jnp.dot(ctx, wo, preferred_element_type=jnp.float32) + outb  # (R, D)
    src = x + attn                                    # residual (dropout1 == identity)

    # ---- pre-norm 2 + position-wise feed-forward ----------------------------
    src2 = layernorm(src, ln2w, ln2b)                            # (R, D)
    h1 = jnp.dot(src2, w1t, preferred_element_type=jnp.float32) + b1     # (R, F)
    h1 = jnp.maximum(h1, 0.0)                         # ReLU (dropout == identity)
    ffn = jnp.dot(h1, w2t, preferred_element_type=jnp.float32) + b2      # (R, D)

    o_ref[...] = src + ffn                            # residual (dropout2 == identity)


# ------------------------- offline parameter prep ---------------------------
def prepare_params(p):
    """Restructure PyTorch-layout params once, outside the kernel.

    Pre-transposes every weight, folds the 1/sqrt(head_dim) scale into the q
    projection weight+bias, and packs everything into ONE (168, 128) f32 array
    so the kernel issues a single parameter DMA.
    """
    D, F = D_MODEL, DIM_FF
    scale = 1.0 / math.sqrt(HEAD_DIM)

    wq = (p["in_w"][:D] * scale).T                     # (D, D)  scale folded
    wk = p["in_w"][D:2 * D].T
    wv = p["in_w"][2 * D:].T
    wqkv = jnp.concatenate([wq, wk, wv], axis=1)       # (D, 3D)
    bqkv = jnp.concatenate(
        [p["in_b"][:D] * scale, p["in_b"][D:2 * D], p["in_b"][2 * D:]])   # (3D,)

    packed = jnp.zeros((PARAM_ROWS, LANES), jnp.float32)

    def put(mat, row, arr):
        arr = jnp.asarray(arr, jnp.float32)
        r, c = arr.shape
        return mat.at[row:row + r, :c].set(arr)

    packed = put(packed, ROW_WQKV, wqkv)               # (32, 96)
    packed = put(packed, ROW_WO, p["out_w"].T)         # (32, 32)
    packed = put(packed, ROW_W1T, p["w1"].T)           # (32, 64)
    packed = put(packed, ROW_W2T, p["w2"].T)           # (64, 32)

    vec_rows = [p["ln1_w"], p["ln1_b"], p["ln2_w"], p["ln2_b"],
                p["out_b"], p["b2"], p["b1"], bqkv]
    for i, v in enumerate(vec_rows):
        packed = put(packed, ROW_VEC + i, v.reshape(1, -1))

    return packed


# ------------------------------ JAX wrapper ----------------------------------
def transformer_encoder_layer(src_sbd, packed_params):
    """src_sbd: (seq_len, batch, d_model) — same layout as the PyTorch module."""
    S, B, D = src_sbd.shape
    R = S * B
    x2d = src_sbd.reshape(R, D)      # free reshape: rows in (seq, batch) order

    vmem = pl.BlockSpec(memory_space=pltpu.MemorySpace.VMEM)
    out = pl.pallas_call(
        _encoder_layer_kernel,
        out_shape=jax.ShapeDtypeStruct((R, D), jnp.float32),
        in_specs=[vmem, vmem],
        out_specs=vmem,
    )(x2d, packed_params)

    return out.reshape(S, B, D)      # free reshape back to (seq, batch, d_model)


# --------------------------- plain-JAX reference -----------------------------
def _reference(src, p):
    S, B, D = src.shape

    def ln(v, w, b):
        mu = jnp.mean(v, -1, keepdims=True)
        var = jnp.mean((v - mu) ** 2, -1, keepdims=True)
        return (v - mu) / jnp.sqrt(var + LN_EPS) * w + b

    x = src
    s2 = ln(x, p["ln1_w"], p["ln1_b"])
    qkv = jnp.einsum("sbd,ed->sbe", s2, p["in_w"]) + p["in_b"]
    q, k, v = jnp.split(qkv, 3, axis=-1)
    q = q.reshape(S, B, NHEAD, HEAD_DIM)
    k = k.reshape(S, B, NHEAD, HEAD_DIM)
    v = v.reshape(S, B, NHEAD, HEAD_DIM)
    sc = jnp.einsum("qbhd,kbhd->bhqk", q, k) / math.sqrt(HEAD_DIM)
    pr = jax.nn.softmax(sc, axis=-1)
    o = jnp.einsum("bhqk,kbhd->qbhd", pr, v).reshape(S, B, D)
    o = jnp.einsum("sbf,df->sbd", o, p["out_w"]) + p["out_b"]
    x = x + o
    s2 = ln(x, p["ln2_w"], p["ln2_b"])
    h = jax.nn.relu(jnp.einsum("sbd,fd->sbf", s2, p["w1"]) + p["b1"])
    h = jnp.einsum("sbf,df->sbd", h, p["w2"]) + p["b2"]
    return x + h


# --------------------------------- main --------------------------------------
if __name__ == "__main__":
    key = jax.random.PRNGKey(0)
    keys = jax.random.split(key, 16)

    def rnd(k, shape, scale=0.05):
        return (scale * jax.random.normal(k, shape)).astype(jnp.float32)

    params = {
        "in_w": rnd(keys[0], (3 * D_MODEL, D_MODEL)),
        "in_b": rnd(keys[1], (3 * D_MODEL,)),
        "out_w": rnd(keys[2], (D_MODEL, D_MODEL)),
        "out_b": rnd(keys[3], (D_MODEL,)),
        "ln1_w": 1.0 + rnd(keys[4], (D_MODEL,)),
        "ln1_b": rnd(keys[5], (D_MODEL,)),
        "ln2_w": 1.0 + rnd(keys[6], (D_MODEL,)),
        "ln2_b": rnd(keys[7], (D_MODEL,)),
        "w1": rnd(keys[8], (DIM_FF, D_MODEL)),
        "b1": rnd(keys[9], (DIM_FF,)),
        "w2": rnd(keys[10], (D_MODEL, DIM_FF)),
        "b2": rnd(keys[11], (D_MODEL,)),
    }

    src = jax.random.normal(keys[12], (SEQ, BATCH, D_MODEL), dtype=jnp.float32)

    packed = prepare_params(params)            # offline, once
    out = transformer_encoder_layer(src, packed)
    out = jax.block_until_ready(out)

    ref = _reference(src, params)
    assert out.shape == src.shape
    assert jnp.allclose(out, ref, atol=1e-4, rtol=1e-4), \
        f"max abs diff {jnp.max(jnp.abs(out - ref))}"

    print("KERNEL_OK")
</pallas_src>

<mosaic_0001>
module attributes {stable_mosaic.version = 11 : i64} {
  func.func @_encoder_layer_kernel(%arg0: memref<16x32xf32, #tpu.memory_space<vmem>>, %arg1: memref<168x128xf32, #tpu.memory_space<vmem>>, %arg2: memref<16x32xf32, #tpu.memory_space<vmem>>) attributes {dimension_semantics = [], scalar_prefetch = 0 : i64, scratch_operands = 0 : i64, tpu.core_type = #tpu.core_type<tc>} {
    %c0 = arith.constant 0 : index
    %c0_0 = arith.constant 0 : index
    %0 = vector.load %arg0[%c0, %c0_0] : memref<16x32xf32, #tpu.memory_space<vmem>>, vector<16x32xf32>
    %c0_1 = arith.constant 0 : index
    %c0_2 = arith.constant 0 : index
    %1 = vector.load %arg1[%c0_1, %c0_2] : memref<168x128xf32, #tpu.memory_space<vmem>>, vector<32x96xf32>
    %c32 = arith.constant 32 : index
    %c0_3 = arith.constant 0 : index
    %2 = vector.load %arg1[%c32, %c0_3] : memref<168x128xf32, #tpu.memory_space<vmem>>, vector<32x32xf32>
    %c64 = arith.constant 64 : index
    %c0_4 = arith.constant 0 : index
    %3 = vector.load %arg1[%c64, %c0_4] : memref<168x128xf32, #tpu.memory_space<vmem>>, vector<32x64xf32>
    %c96 = arith.constant 96 : index
    %c0_5 = arith.constant 0 : index
    %4 = vector.load %arg1[%c96, %c0_5] : memref<168x128xf32, #tpu.memory_space<vmem>>, vector<64x32xf32>
    %c160 = arith.constant 160 : index
    %c0_6 = arith.constant 0 : index
    %5 = vector.load %arg1[%c160, %c0_6] : memref<168x128xf32, #tpu.memory_space<vmem>>, vector<1x32xf32>
    %c161 = arith.constant 161 : index
    %c0_7 = arith.constant 0 : index
    %6 = vector.load %arg1[%c161, %c0_7] : memref<168x128xf32, #tpu.memory_space<vmem>>, vector<1x32xf32>
    %c162 = arith.constant 162 : index
    %c0_8 = arith.constant 0 : index
    %7 = vector.load %arg1[%c162, %c0_8] : memref<168x128xf32, #tpu.memory_space<vmem>>, vector<1x32xf32>
    %c163 = arith.constant 163 : index
    %c0_9 = arith.constant 0 : index
    %8 = vector.load %arg1[%c163, %c0_9] : memref<168x128xf32, #tpu.memory_space<vmem>>, vector<1x32xf32>
    %c164 = arith.constant 164 : index
    %c0_10 = arith.constant 0 : index
    %9 = vector.load %arg1[%c164, %c0_10] : memref<168x128xf32, #tpu.memory_space<vmem>>, vector<1x32xf32>
    %c165 = arith.constant 165 : index
    %c0_11 = arith.constant 0 : index
    %10 = vector.load %arg1[%c165, %c0_11] : memref<168x128xf32, #tpu.memory_space<vmem>>, vector<1x32xf32>
    %c166 = arith.constant 166 : index
    %c0_12 = arith.constant 0 : index
    %11 = vector.load %arg1[%c166, %c0_12] : memref<168x128xf32, #tpu.memory_space<vmem>>, vector<1x64xf32>
    %c167 = arith.constant 167 : index
    %c0_13 = arith.constant 0 : index
    %12 = vector.load %arg1[%c167, %c0_13] : memref<168x128xf32, #tpu.memory_space<vmem>>, vector<1x96xf32>
    %cst = arith.constant dense<0.000000e+00> : vector<16xf32>
    %13 = vector.multi_reduction <add>, %0, %cst [1] : vector<16x32xf32> to vector<16xf32>
    %14 = vector.shape_cast %13 : vector<16xf32> to vector<16x1xf32>
    %cst_14 = arith.constant 3.200000e+01 : f32
    %15 = vector.broadcast %cst_14 : f32 to vector<16x1xf32>
    %16 = arith.divf %14, %15 : vector<16x1xf32>
    %17 = vector.broadcast %16 : vector<16x1xf32> to vector<16x32xf32>
    %18 = arith.subf %0, %17 : vector<16x32xf32>
    %19 = arith.mulf %18, %18 : vector<16x32xf32>
    %cst_15 = arith.constant dense<0.000000e+00> : vector<16xf32>
    %20 = vector.multi_reduction <add>, %19, %cst_15 [1] : vector<16x32xf32> to vector<16xf32>
    %21 = vector.shape_cast %20 : vector<16xf32> to vector<16x1xf32>
    %cst_16 = arith.constant 3.200000e+01 : f32
    %22 = vector.broadcast %cst_16 : f32 to vector<16x1xf32>
    %23 = arith.divf %21, %22 : vector<16x1xf32>
    %cst_17 = arith.constant 9.99999974E-6 : f32
    %24 = vector.broadcast %cst_17 : f32 to vector<16x1xf32>
    %25 = arith.addf %23, %24 : vector<16x1xf32>
    %26 = math.rsqrt %25 : vector<16x1xf32>
    %27 = vector.broadcast %26 : vector<16x1xf32> to vector<16x32xf32>
    %28 = arith.mulf %18, %27 : vector<16x32xf32>
    %29 = vector.broadcast %5 : vector<1x32xf32> to vector<16x32xf32>
    %30 = arith.mulf %28, %29 : vector<16x32xf32>
    %31 = vector.broadcast %6 : vector<1x32xf32> to vector<16x32xf32>
    %32 = arith.addf %30, %31 : vector<16x32xf32>
    %cst_18 = arith.constant dense<0.000000e+00> : vector<16x96xf32>
    %33 = tpu.matmul %32, %1, %cst_18 {dimension_numbers = #tpu.dot_dimension_numbers<[1], [0], [0], [1], [0, 0, 1, 1], [], []>} : vector<16x32xf32>, vector<32x96xf32>, vector<16x96xf32> -> vector<16x96xf32>
    %34 = vector.broadcast %12 : vector<1x96xf32> to vector<16x96xf32>
    %35 = arith.addf %33, %34 : vector<16x96xf32>
    %36 = vector.extract_strided_slice %35 {offsets = [0, 0], sizes = [16, 32], strides = [1, 1]} : vector<16x96xf32> to vector<16x32xf32>
    %37 = vector.shape_cast %36 : vector<16x32xf32> to vector<16x4x8xf32>
    %38 = tpu.transpose %37, [1, 0, 2] : vector<16x4x8xf32> -> vector<4x16x8xf32>
    %39 = vector.extract_strided_slice %35 {offsets = [0, 32], sizes = [16, 32], strides = [1, 1]} : vector<16x96xf32> to vector<16x32xf32>
    %40 = vector.shape_cast %39 : vector<16x32xf32> to vector<16x4x8xf32>
    %41 = tpu.transpose %40, [1, 0, 2] : vector<16x4x8xf32> -> vector<4x16x8xf32>
    %42 = vector.extract_strided_slice %35 {offsets = [0, 64], sizes = [16, 32], strides = [1, 1]} : vector<16x96xf32> to vector<16x32xf32>
    %43 = vector.shape_cast %42 : vector<16x32xf32> to vector<16x4x8xf32>
    %44 = tpu.transpose %43, [1, 0, 2] : vector<16x4x8xf32> -> vector<4x16x8xf32>
    %45 = tpu.iota {dimensions = array<i32: 0>} : vector<16x16xi32>
    %46 = tpu.iota {dimensions = array<i32: 1>} : vector<16x16xi32>
    %c2_i32 = arith.constant 2 : i32
    %c0_i32 = arith.constant 0 : i32
    %47 = arith.cmpi eq, %c2_i32, %c0_i32 : i32
    %c1_i32 = arith.constant 1 : i32
    %48 = arith.select %47, %c1_i32, %c2_i32 : i32
    %49 = vector.broadcast %48 : i32 to vector<16x16xi32>
    %50 = arith.remsi %45, %49 : vector<16x16xi32>
    %c0_i32_19 = arith.constant 0 : i32
    %51 = vector.broadcast %c0_i32_19 : i32 to vector<16x16xi32>
    %52 = arith.cmpi ne, %50, %51 : vector<16x16xi32>
    %c0_i32_20 = arith.constant 0 : i32
    %53 = vector.broadcast %c0_i32_20 : i32 to vector<16x16xi32>
    %54 = arith.cmpi slt, %50, %53 : vector<16x16xi32>
    %c0_i32_21 = arith.constant 0 : i32
    %55 = arith.cmpi slt, %48, %c0_i32_21 : i32
    %56 = vector.broadcast %55 : i1 to vector<16x16xi1>
    %57 = vector.broadcast %56 : vector<16x16xi1> to vector<16x16xi1>
    %58 = arith.xori %54, %57 : vector<16x16xi1>
    %59 = arith.andi %58, %52 : vector<16x16xi1>
    %60 = vector.broadcast %48 : i32 to vector<16x16xi32>
    %61 = arith.addi %50, %60 : vector<16x16xi32>
    %62 = arith.select %59, %61, %50 : vector<16x16xi1>, vector<16x16xi32>
    %c2_i32_22 = arith.constant 2 : i32
    %c0_i32_23 = arith.constant 0 : i32
    %63 = arith.cmpi eq, %c2_i32_22, %c0_i32_23 : i32
    %c1_i32_24 = arith.constant 1 : i32
    %64 = arith.select %63, %c1_i32_24, %c2_i32_22 : i32
    %65 = vector.broadcast %64 : i32 to vector<16x16xi32>
    %66 = arith.remsi %46, %65 : vector<16x16xi32>
    %c0_i32_25 = arith.constant 0 : i32
    %67 = vector.broadcast %c0_i32_25 : i32 to vector<16x16xi32>
    %68 = arith.cmpi ne, %66, %67 : vector<16x16xi32>
    %c0_i32_26 = arith.constant 0 : i32
    %69 = vector.broadcast %c0_i32_26 : i32 to vector<16x16xi32>
    %70 = arith.cmpi slt, %66, %69 : vector<16x16xi32>
    %c0_i32_27 = arith.constant 0 : i32
    %71 = arith.cmpi slt, %64, %c0_i32_27 : i32
    %72 = vector.broadcast %71 : i1 to vector<16x16xi1>
    %73 = vector.broadcast %72 : vector<16x16xi1> to vector<16x16xi1>
    %74 = arith.xori %70, %73 : vector<16x16xi1>
    %75 = arith.andi %74, %68 : vector<16x16xi1>
    %76 = vector.broadcast %64 : i32 to vector<16x16xi32>
    %77 = arith.addi %66, %76 : vector<16x16xi32>
    %78 = arith.select %75, %77, %66 : vector<16x16xi1>, vector<16x16xi32>
    %79 = arith.cmpi eq, %62, %78 : vector<16x16xi32>
    %cst_28 = arith.constant 0.000000e+00 : f32
    %cst_29 = arith.constant -1.000000e+30 : f32
    %80 = vector.broadcast %cst_28 : f32 to vector<16x16xf32>
    %81 = vector.broadcast %cst_29 : f32 to vector<16x16xf32>
    %82 = arith.select %79, %80, %81 : vector<16x16xi1>, vector<16x16xf32>
    "tpu.trace_start"() <{level = 10 : i32, message = "hxd,hyd->hxy"}> : () -> ()
    %cst_30 = arith.constant dense<0.000000e+00> : vector<4x16x16xf32>
    %83 = tpu.matmul %38, %41, %cst_30 {dimension_numbers = #tpu.dot_dimension_numbers<[2], [2], [1], [1], [0, 0, 0, 1, 1, 1], [0], [0]>} : vector<4x16x8xf32>, vector<4x16x8xf32>, vector<4x16x16xf32> -> vector<4x16x16xf32>
    "tpu.trace_stop"() : () -> ()
    %84 = vector.shape_cast %82 : vector<16x16xf32> to vector<1x16x16xf32>
    %85 = vector.broadcast %84 : vector<1x16x16xf32> to vector<4x16x16xf32>
    %86 = arith.addf %83, %85 : vector<4x16x16xf32>
    %cst_31 = arith.constant dense<0xFF800000> : vector<4x16xf32>
    %87 = vector.multi_reduction <maximumf>, %86, %cst_31 [2] : vector<4x16x16xf32> to vector<4x16xf32>
    %88 = vector.shape_cast %87 : vector<4x16xf32> to vector<4x16x1xf32>
    %89 = vector.broadcast %88 : vector<4x16x1xf32> to vector<4x16x16xf32>
    %90 = arith.subf %86, %89 : vector<4x16x16xf32>
    %91 = math.exp %90 : vector<4x16x16xf32>
    %cst_32 = arith.constant dense<0.000000e+00> : vector<4x16xf32>
    %92 = vector.multi_reduction <add>, %91, %cst_32 [2] : vector<4x16x16xf32> to vector<4x16xf32>
    %93 = vector.shape_cast %92 : vector<4x16xf32> to vector<4x16x1xf32>
    %94 = tpu.reciprocal %93 : vector<4x16x1xf32> -> vector<4x16x1xf32>
    %95 = vector.broadcast %94 : vector<4x16x1xf32> to vector<4x16x16xf32>
    %96 = arith.mulf %91, %95 : vector<4x16x16xf32>
    "tpu.trace_start"() <{level = 10 : i32, message = "hxy,hyd->hxd"}> : () -> ()
    %cst_33 = arith.constant dense<0.000000e+00> : vector<4x16x8xf32>
    %97 = tpu.matmul %96, %44, %cst_33 {dimension_numbers = #tpu.dot_dimension_numbers<[2], [1], [1], [2], [0, 0, 0, 1, 1, 2], [0], [0]>} : vector<4x16x16xf32>, vector<4x16x8xf32>, vector<4x16x8xf32> -> vector<4x16x8xf32>
    "tpu.trace_stop"() : () -> ()
    %98 = tpu.transpose %97, [1, 0, 2] : vector<4x16x8xf32> -> vector<16x4x8xf32>
    %99 = vector.shape_cast %98 : vector<16x4x8xf32> to vector<16x32xf32>
    %cst_34 = arith.constant dense<0.000000e+00> : vector<16x32xf32>
    %100 = tpu.matmul %99, %2, %cst_34 {dimension_numbers = #tpu.dot_dimension_numbers<[1], [0], [0], [1], [0, 0, 1, 1], [], []>} : vector<16x32xf32>, vector<32x32xf32>, vector<16x32xf32> -> vector<16x32xf32>
    %101 = vector.broadcast %9 : vector<1x32xf32> to vector<16x32xf32>
    %102 = arith.addf %100, %101 : vector<16x32xf32>
    %103 = arith.addf %0, %102 : vector<16x32xf32>
    %cst_35 = arith.constant dense<0.000000e+00> : vector<16xf32>
    %104 = vector.multi_reduction <add>, %103, %cst_35 [1] : vector<16x32xf32> to vector<16xf32>
    %105 = vector.shape_cast %104 : vector<16xf32> to vector<16x1xf32>
    %cst_36 = arith.constant 3.200000e+01 : f32
    %106 = vector.broadcast %cst_36 : f32 to vector<16x1xf32>
    %107 = arith.divf %105, %106 : vector<16x1xf32>
    %108 = vector.broadcast %107 : vector<16x1xf32> to vector<16x32xf32>
    %109 = arith.subf %103, %108 : vector<16x32xf32>
    %110 = arith.mulf %109, %109 : vector<16x32xf32>
    %cst_37 = arith.constant dense<0.000000e+00> : vector<16xf32>
    %111 = vector.multi_reduction <add>, %110, %cst_37 [1] : vector<16x32xf32> to vector<16xf32>
    %112 = vector.shape_cast %111 : vector<16xf32> to vector<16x1xf32>
    %cst_38 = arith.constant 3.200000e+01 : f32
    %113 = vector.broadcast %cst_38 : f32 to vector<16x1xf32>
    %114 = arith.divf %112, %113 : vector<16x1xf32>
    %cst_39 = arith.constant 9.99999974E-6 : f32
    %115 = vector.broadcast %cst_39 : f32 to vector<16x1xf32>
    %116 = arith.addf %114, %115 : vector<16x1xf32>
    %117 = math.rsqrt %116 : vector<16x1xf32>
    %118 = vector.broadcast %117 : vector<16x1xf32> to vector<16x32xf32>
    %119 = arith.mulf %109, %118 : vector<16x32xf32>
    %120 = vector.broadcast %7 : vector<1x32xf32> to vector<16x32xf32>
    %121 = arith.mulf %119, %120 : vector<16x32xf32>
    %122 = vector.broadcast %8 : vector<1x32xf32> to vector<16x32xf32>
    %123 = arith.addf %121, %122 : vector<16x32xf32>
    %cst_40 = arith.constant dense<0.000000e+00> : vector<16x64xf32>
    %124 = tpu.matmul %123, %3, %cst_40 {dimension_numbers = #tpu.dot_dimension_numbers<[1], [0], [0], [1], [0, 0, 1, 1], [], []>} : vector<16x32xf32>, vector<32x64xf32>, vector<16x64xf32> -> vector<16x64xf32>
    %125 = vector.broadcast %11 : vector<1x64xf32> to vector<16x64xf32>
    %126 = arith.addf %124, %125 : vector<16x64xf32>
    %cst_41 = arith.constant 0.000000e+00 : f32
    %127 = vector.broadcast %cst_41 : f32 to vector<16x64xf32>
    %128 = arith.maximumf %126, %127 : vector<16x64xf32>
    %cst_42 = arith.constant dense<0.000000e+00> : vector<16x32xf32>
    %129 = tpu.matmul %128, %4, %cst_42 {dimension_numbers = #tpu.dot_dimension_numbers<[1], [0], [0], [1], [0, 0, 1, 1], [], []>} : vector<16x64xf32>, vector<64x32xf32>, vector<16x32xf32> -> vector<16x32xf32>
    %130 = vector.broadcast %10 : vector<1x32xf32> to vector<16x32xf32>
    %131 = arith.addf %129, %130 : vector<16x32xf32>
    %132 = arith.addf %103, %131 : vector<16x32xf32>
    %c0_43 = arith.constant 0 : index
    %c0_44 = arith.constant 0 : index
    %133 = vector.load %arg2[%c0_43, %c0_44] : memref<16x32xf32, #tpu.memory_space<vmem>>, vector<16x32xf32>
    tpu.vector_store %arg2[%c0_43, %c0_44], %132 {strides = array<i32>} : memref<16x32xf32, #tpu.memory_space<vmem>>, vector<16x32xf32>,
    return
  }
}

</mosaic_0001>

<bundles_post_ra>
// kernel: tpu_custom_call.1
= control target key start
LH: loop header
LB: loop body
LE: loop exit
PB: predicated region body
PF: predicated region fallthrough
CT: control target
= control target key end

     0   :  { %7 = vsyncpa [#allocation3], 0  ;;  %s2644_s0 = inlined_call_operand.hbm [shape: f32[16,32], index: 0, kind: input, shape index: {}]   ;;  %s2645_s1 = inlined_call_operand.hbm [shape: f32[168,128], index: 1, kind: input, shape index: {}]   ;;  %s2646_s2 = inlined_call_operand.hbm [shape: f32[16,32], index: 2, kind: output, shape index: {}]  }
   0x1   :  { %8 = vsyncpa [#allocation6], 0 }
   0x2   :  { %9 = vsyncpa [#allocation4], 0  ;;  %s14_s11 = sshll.u32 %s2644_s0, 4  ;;  %s2004_s12 = smov [#allocation2]   ;;  %s15_s11 = int_to_ptr.hbm [resolvable:$true] %s14_s11 }
   0x3   :  { %s16_s13 = sshll.u32 %s2004_s12, 4  ;;  %s27_s16 = sshll.u32 %s2645_s1, 4  ;;  %s17_s13 = int_to_ptr.vmem [resolvable:$true] %s16_s13  ;;  %s28_s16 = int_to_ptr.hbm [resolvable:$true] %s27_s16 }
   0x4   :  { %s2005_s17 = smov 128   ;;  %s2006_s18 = smov 8  }
   0x5   :  { %22 = dma.hbm_to_vmem [thread:$0]  %s15_s11, 256, %s17_s13, [#allocation3], %s2005_s17, %s2005_s17, %s2006_s18  }
   0x6   :  { %s2007_s19 = smov [#allocation5]  }
   0x7   :  { %s29_s20 = sshll.u32 %s2007_s19, 4  ;;  %s30_s20 = int_to_ptr.vmem [resolvable:$true] %s29_s20 }
   0x8   :  { %35 = dma.hbm_to_vmem [thread:$0]  %s28_s16, 2688, %s30_s20, [#allocation6], %s2005_s17, %s2005_s17, %s2006_s18  }
   0x9   :  { %1998 = dma.done.wait [#allocation3], 256  }
   0xa   :  { %1999 = vsyncadd [#allocation3], 4294967040 }
   0xb   :  { %2000 = dma.done.wait [#allocation6], 2688  }
   0xc   :  { %2001 = vsyncadd [#allocation6], 4294964608  ;;  %vm74_vm0 = vcmask 261120   ;;  %v44_v0 = vld [vmem:[#allocation2] sm:$0xff]  ;;  %v45_v2 = vld [vmem:[#allocation2 + $0x8] sm:$0xff]  ;;  %v2008_v4 = vmov 32.0  }
   0xd   :  { %v75_v1 = vsel %vm74_vm0, %v44_v0, 0.0  ;;  %v78_v3 = vsel %vm74_vm0, %v45_v2, 0.0  ;;  %1882 = vrcp.f32 %v2008_v4  ;;  %v49_v21 = vld [vmem:[#allocation5 + $0x18] sm:$0xff]  ;;  %v48_v22 = vld [vmem:[#allocation5 + $0x10] sm:$0xff]  ;;  %v47_v23 = vld [vmem:[#allocation5 + $0x8] sm:$0xff]  ;;  %s2009_s0 = smov 120  }
   0xe   :  { %76 = vadd.xlane.f32.xlu0 %v75_v1  ;;  %151 = vmatpush.msra.mxu0 %v49_v21  ;;  %v46_v24 = vld [vmem:[#allocation5] sm:$0xff]  ;;  %s2010_s1 = smov 96   ;;  %s2011_s21 = smov 104   ;;  %v2013_v61 = vmov 1983009808   ;;  %vm183_vm8 = vcmask 1047556  }
   0xf   :  { %v1874_v39 = vld [vmem:[#allocation5 + $0xa0] ss:$0 sm:$0xff]  ;;  %v1875_v43 = vld [vmem:[#allocation5 + $0xa1] ss:$0 sm:$0xff]  ;;  %v1876_v53 = vld [vmem:[#allocation5 + $0xa7] ss:$0 sm:$0xff]  ;;  %v188_v62 = vunpack.c.l.s4 %v2013_v61 }
  0x10   :  { %152 = vmatpush.msra.mxu0 %v48_v22  ;;  %s2012_s22 = smov 112   ;;  %s2015_s23 = smov 64   ;;  %vm936_vm9 = vcmask 64512   ;;  %vm1077_vm11 = vcmask 130048  }
  0x11   :  { %s2017_s24 = smov 16   ;;  %s2018_s25 = smov 24  }
  0x12   :  { %153 = vmatpush.msra.mxu0 %v47_v23  ;;  %s2019_s26 = smov [#allocation7]   ;;  %s1792_s30 = sshll.u32 %s2646_s2, 4  ;;  %s1793_s30 = int_to_ptr.hbm [resolvable:$true] %s1792_s30 }
  0x13   :  { %v1883_v5 = vpop.eup %1882  ;;  %s1790_s27 = sshll.u32 %s2019_s26, 4  ;;  %s1791_s27 = int_to_ptr.vmem [resolvable:$true] %s1790_s27 }
  0x14   :  { %v82_v6 = vmul.f32 32.0, %v1883_v5  ;;  %vm86_vm1 = vweird.f32 %v1883_v5  ;;  %154 = vmatpush.msra.mxu0 %v46_v24 }
  0x16   :  { %79 = vadd.xlane.f32.xlu0 %v78_v3  ;;  %v83_v7 = vsub.f32 1.0, %v82_v6 }
  0x18   :  { %v84_v8 = vmul.f32 %v1883_v5, %v83_v7 }
  0x1a   :  { %v85_v9 = vadd.f32 %v1883_v5, %v84_v8 }
  0x1c   :  { %v2049_v10 = vsel %vm86_vm1, %v1883_v5, %v85_v9 }
  0x81   :  { %v77_v11 = vpop.xlane.xlu0 %76 }
  0x82   :  { %v88_v12 = vmul.f32 %v2049_v10, %v77_v11 }
  0x84   :  { %v90_v13 = vsub.f32 %v44_v0, %v88_v12 }
  0x86   :  { %v92_v14 = vmul.f32 %v90_v13, %v90_v13 }
  0x88   :  { %v94_v15 = vsel %vm74_vm0, %v92_v14, 0.0 }
  0x89   :  { %95 = vadd.xlane.f32.xlu1 %v94_v15  ;;  %v80_v16 = vpop.xlane.xlu0 %79 }
  0x8a   :  { %v89_v17 = vmul.f32 %v2049_v10, %v80_v16 }
  0x8c   :  { %v91_v18 = vsub.f32 %v45_v2, %v89_v17  ;;  %v2087_v2 = vunpack.c.0.s8 %v188_v62 }
  0x8e   :  { %v93_v19 = vmul.f32 %v91_v18, %v91_v18 }
  0x90   :  { %v97_v20 = vsel %vm74_vm0, %v93_v19, 0.0 }
  0x91   :  { %98 = vadd.xlane.f32.xlu1 %v97_v20 }
  0xfc   :  { %v96_v25 = vpop.xlane.xlu1 %95 }
  0xfd   :  { %v100_v26 = vmul.f32 %v96_v25, %v2049_v10 }
  0xff   :  { %v102_v27 = vadd.f32 1e-05, %v100_v26 }
 0x101   :  { %1884 = vrsqrt.f32 %v102_v27  ;;  %vm110_vm3 = vweird.f32 %v102_v27 }
 0x104   :  { %v99_v28 = vpop.xlane.xlu1 %98 }
 0x105   :  { %v101_v29 = vmul.f32 %v99_v28, %v2049_v10 }
 0x107   :  { %v1885_v30 = vpop.eup %1884  ;;  %v103_v31 = vadd.f32 1e-05, %v101_v29 }
 0x108   :  { %v105_v32 = vmul.f32 %v1885_v30, %v102_v27  ;;  %vm111_vm2 = vweird.f32 %v1885_v30 }
 0x109   :  { %1886 = vrsqrt.f32 %v103_v31  ;;  %vm112_vm4 = vmor %vm110_vm3, %vm111_vm2  ;;  %vm120_vm6 = vweird.f32 %v103_v31 }
 0x10a   :  { %v106_v33 = vmul.f32 %v1885_v30, %v105_v32 }
 0x10c   :  { %v107_v34 = vmul.f32 0.5, %v106_v33 }
 0x10e   :  { %v108_v35 = vsub.f32 1.5, %v107_v34 }
 0x10f   :  { %v1887_v36 = vpop.eup %1886 }
 0x110   :  { %v109_v37 = vmul.f32 %v1885_v30, %v108_v35  ;;  %v115_v38 = vmul.f32 %v1887_v36, %v103_v31  ;;  %vm121_vm5 = vweird.f32 %v1887_v36 }
 0x111   :  { %vm122_vm7 = vmor %vm120_vm6, %vm121_vm5 }
 0x112   :  { %v113_v40 = vsel %vm112_vm4, %v1885_v30, %v109_v37  ;;  %v116_v41 = vmul.f32 %v1887_v36, %v115_v38 }
 0x113   :  { %v124_v42 = vmul.f32 %v113_v40, %v90_v13  ;;  %v2014_v13 = vmov 1934713408  }
 0x114   :  { %v117_v44 = vmul.f32 0.5, %v116_v41  ;;  %v212_v14 = vunpack.c.l.s4 %v2014_v13 }
 0x115   :  { %v127_v45 = vmul.f32 %v1874_v39, %v124_v42 }
 0x116   :  { %v118_v46 = vsub.f32 1.5, %v117_v44  ;;  %v2115_v22 = vunpack.c.0.s8 %v212_v14 }
 0x117   :  { %v130_v47 = vadd.f32 %v1875_v43, %v127_v45 }
 0x118   :  { %v119_v48 = vmul.f32 %v1887_v36, %v118_v46 }
 0x119   :  { %1806 = vmatmul.msk.f32.vlgmr.msra.gmra.mxu0 %vm74_vm0, %v130_v47 }
 0x11a   :  { %v123_v49 = vsel %vm122_vm7, %v1887_v36, %v119_v48 }
 0x11b   :  { %v125_v50 = vmul.f32 %v123_v49, %v91_v18 }
 0x11d   :  { %v128_v51 = vmul.f32 %v1874_v39, %v125_v50 }
 0x11f   :  { %v131_v52 = vadd.f32 %v1875_v43, %v128_v51 }
 0x121   :  { %1807 = vmatmul.msk.f32.gmra.mxu0 %vm74_vm0, %v131_v52 }
 0x196   :  { %v156_v54 = vpop.f32.mrf.mxu0 }
 0x197   :  { %v2059_v55 = vadd.f32 %v1876_v53, %v156_v54 }
 0x199   :  { %164 = vrot.lane.b32.xlu1 %v2059_v55, %s2009_s0  ;;  %v185_v3 = vrot.slane %v2059_v55, 4 }
 0x19e   :  { %v159_v56 = vpop.f32.mrf.mxu0 }
 0x19f   :  { %v2062_v57 = vadd.f32 %v1876_v53, %v159_v56 }
 0x1a1   :  { %403 = vrot.lane.b32.xlu1 %v2059_v55, %s2010_s1  ;;  %178 = vrot.lane.b32.xlu0 %v2062_v57, %s2011_s21  ;;  %v241_v0 = vrot.slane %v2062_v57, 4  ;;  %v1854_v62 = vpack.i.bf16 %v2059_v55, %v2062_v57 }
 0x1a2   :  { %166 = vrot.lane.b32.xlu2 %v2062_v57, %s2009_s0 }
 0x1aa   :  { %172 = vrot.lane.b32.xlu2 %v2062_v57, %s2012_s22 }
 0x1b2   :  { %170 = vrot.lane.b32.xlu2 %v2059_v55, %s2012_s22 }
 0x1ba   :  { %176 = vrot.lane.b32.xlu2 %v2059_v55, %s2011_s21 }
 0x1c2   :  { %405 = vrot.lane.b32.xlu2 %v2062_v57, %s2010_s1 }
 0x1fc   :  { %v2073_v58 = vpop.permute.xlu2 %166 }
 0x1fd   :  { %409 = vrot.lane.b32.xlu0 %v2073_v58, %s2010_s1  ;;  %v253_v16 = vrot.slane %v2073_v58, 4 }
 0x204   :  { %v2077_v59 = vpop.permute.xlu2 %172 }
 0x205   :  { %413 = vrot.lane.b32.xlu2 %v2077_v59, %s2010_s1  ;;  %v1859_v60 = vpack.i.bf16 %v2077_v59, %v2073_v58  ;;  %v239_v63 = vrot.slane %v2077_v59, 4  ;;  %v242_v5 = vsel %vm183_vm8, %v2077_v59, %v241_v0 }
 0x206   :  { %v250_v12 = vperm.slane %v242_v5, %v2087_v2 }
 0x207   :  { %v240_v8 = vsel %vm183_vm8, %v239_v63, %v2062_v57 }
 0x208   :  { %v246_v15 = vperm.slane %v240_v8, %v2087_v2  ;;  %v277_v21 = vrot.slane %v250_v12, 4 }
 0x20a   :  { %v265_v26 = vrot.slane %v246_v15, 4 }
 0x20b   :  { %v2085_v1 = vpop.permute.xlu1 %164 }
 0x20c   :  { %v2090_v4 = vpop.permute.xlu2 %170  ;;  %v197_v19 = vrot.slane %v2085_v1, 4 }
 0x20d   :  { %v182_v6 = vrot.slane %v2090_v4, 4  ;;  %411 = vrot.lane.b32.xlu1 %v2090_v4, %s2010_s1  ;;  %407 = vrot.lane.b32.xlu2 %v2085_v1, %s2010_s1  ;;  %v1864_v7 = vpack.i.bf16 %v2090_v4, %v2085_v1  ;;  %v186_v11 = vsel %vm183_vm8, %v2090_v4, %v185_v3 }
 0x20e   :  { %v194_v18 = vperm.slane %v186_v11, %v2087_v2 }
 0x20f   :  { %v184_v9 = vsel %vm183_vm8, %v182_v6, %v2059_v55 }
 0x210   :  { %v190_v17 = vperm.slane %v184_v9, %v2087_v2  ;;  %v221_v31 = vrot.slane %v194_v18, 4 }
 0x212   :  { %v209_v30 = vrot.slane %v190_v17, 4 }
 0x213   :  { %v2113_v20 = vpop.permute.xlu0 %178 }
 0x214   :  { %v251_v23 = vrot.slane %v2113_v20, 4  ;;  %v254_v24 = vsel %vm183_vm8, %v2113_v20, %v253_v16  ;;  %v2120_v25 = vpop.permute.xlu2 %176  ;;  %417 = vrot.lane.b32.xlu0 %v2113_v20, %s2010_s1 }
 0x215   :  { %v262_v27 = vperm.slane %v254_v24, %v2087_v2  ;;  %v195_v28 = vrot.slane %v2120_v25, 4  ;;  %v198_v29 = vsel %vm183_vm8, %v2120_v25, %v197_v19 }
 0x216   :  { %v252_v32 = vsel %vm183_vm8, %v251_v23, %v2073_v58  ;;  %v206_v33 = vperm.slane %v198_v29, %v2087_v2 }
 0x217   :  { %v258_v34 = vperm.slane %v252_v32, %v2087_v2  ;;  %v275_v35 = vrot.slane %v262_v27, 4  ;;  %v278_v36 = vsel %vm183_vm8, %v262_v27, %v277_v21  ;;  %v196_v37 = vsel %vm183_vm8, %v195_v28, %v2085_v1 }
 0x218   :  { %v286_v38 = vperm.slane %v278_v36, %v2115_v22  ;;  %v202_v39 = vperm.slane %v196_v37, %v2087_v2  ;;  %v219_v40 = vrot.slane %v206_v33, 4  ;;  %v222_v41 = vsel %vm183_vm8, %v206_v33, %v221_v31 }
 0x219   :  { %v263_v42 = vrot.slane %v258_v34, 4  ;;  %v266_v43 = vsel %vm183_vm8, %v258_v34, %v265_v26  ;;  %v276_v44 = vsel %vm183_vm8, %v275_v35, %v250_v12  ;;  %v230_v45 = vperm.slane %v222_v41, %v2115_v22 }
 0x21a   :  { %v274_v46 = vperm.slane %v266_v43, %v2115_v22  ;;  %v282_v47 = vperm.slane %v276_v44, %v2115_v22  ;;  %v293_v48 = vrot.slane %v286_v38, 4  ;;  %v207_v49 = vrot.slane %v202_v39, 4 }
 0x21b   :  { %v264_v50 = vsel %vm183_vm8, %v263_v42, %v246_v15  ;;  %v210_v51 = vsel %vm183_vm8, %v202_v39, %v209_v30  ;;  %v220_v52 = vsel %vm183_vm8, %v219_v40, %v194_v18  ;;  %v237_v53 = vrot.slane %v230_v45, 4 }
 0x21c   :  { %v270_v54 = vperm.slane %v264_v50, %v2115_v22  ;;  %v289_v56 = vrot.slane %v274_v46, 4  ;;  %v294_v61 = vsel %vm183_vm8, 0.0, %v293_v48  ;;  %415 = vrot.lane.b32.xlu0 %v2120_v25, %s2010_s1  ;;  %v291_v63 = vrot.slane %v282_v47, 4 }
 0x21d   :  { %v208_v0 = vsel %vm183_vm8, %v207_v49, %v190_v17  ;;  %v218_v3 = vperm.slane %v210_v51, %v2115_v22  ;;  %v226_v5 = vperm.slane %v220_v52, %v2115_v22  ;;  %v365_v6 = vrot.slane %v294_v61, 4 }
 0x21e   :  { %v214_v8 = vperm.slane %v208_v0, %v2115_v22  ;;  %v238_v9 = vsel %vm183_vm8, 0.0, %v237_v53  ;;  %v287_v11 = vrot.slane %v270_v54, 4  ;;  %v290_v17 = vsel %vm183_vm8, 0.0, %v289_v56 }
 0x21f   :  { %v233_v12 = vrot.slane %v218_v3, 4  ;;  %v235_v13 = vrot.slane %v226_v5, 4  ;;  %v311_v14 = vrot.slane %v238_v9, 4  ;;  %v306_v15 = vsel %vm183_vm8, %v237_v53, %v226_v5 }
 0x220   :  { %v231_v16 = vrot.slane %v214_v8, 4  ;;  %v310_v55 = vperm.slane %v306_v15, %v2087_v2  ;;  %v288_v57 = vsel %vm183_vm8, 0.0, %v287_v11  ;;  %v292_v23 = vsel %vm183_vm8, 0.0, %v291_v63 }
 0x221   :  { %v234_v18 = vsel %vm183_vm8, 0.0, %v233_v12  ;;  %v236_v19 = vsel %vm183_vm8, 0.0, %v235_v13  ;;  %v295_v21 = vsel %vm183_vm8, %v233_v12, %v214_v8  ;;  %v349_v31 = vsel %vm183_vm8, %v289_v56, %v270_v54 }
 0x222   :  { %v232_v24 = vsel %vm183_vm8, 0.0, %v231_v16  ;;  %v299_v26 = vperm.slane %v295_v21, %v2087_v2  ;;  %v300_v27 = vrot.slane %v234_v18, 4  ;;  %v312_v28 = vsel %vm183_vm8, %v311_v14, %v236_v19 }
 0x223   :  { %v316_v29 = vperm.slane %v312_v28, %v2087_v2  ;;  %v331_v30 = vrot.slane %v310_v55, 4  ;;  %v354_v32 = vrot.slane %v290_v17, 4  ;;  %v353_v35 = vperm.slane %v349_v31, %v2087_v2  ;;  %v406_v28 = vpop.permute.xlu2 %405 }
 0x224   :  { %1855 = vrot.lane.b32.xlu0 %v1854_v62, %s2015_s23  ;;  %v301_v33 = vsel %vm183_vm8, %v300_v27, %v232_v24  ;;  %v319_v34 = vrot.slane %v299_v26, 4  ;;  %v360_v36 = vsel %vm183_vm8, %v293_v48, %v282_v47  ;;  %v366_v44 = vsel %vm183_vm8, %v365_v6, %v292_v23 }
 0x225   :  { %v305_v37 = vperm.slane %v301_v33, %v2087_v2  ;;  %v332_v38 = vsel %vm183_vm8, %v316_v29, %v331_v30  ;;  %v329_v39 = vrot.slane %v316_v29, 4  ;;  %v355_v40 = vsel %vm183_vm8, %v354_v32, %v288_v57  ;;  %v404_v29 = vpop.permute.xlu1 %403 }
 0x226   :  { %v340_v41 = vperm.slane %v332_v38, %v2115_v22  ;;  %v359_v42 = vperm.slane %v355_v40, %v2087_v2  ;;  %v364_v43 = vperm.slane %v360_v36, %v2087_v2  ;;  %v370_v48 = vperm.slane %v366_v44, %v2087_v2 }
 0x227   :  { %v320_v45 = vsel %vm183_vm8, %v305_v37, %v319_v34  ;;  %v317_v46 = vrot.slane %v305_v37, 4  ;;  %v330_v47 = vsel %vm183_vm8, %v329_v39, %v310_v55  ;;  %v373_v52 = vrot.slane %v353_v35, 4 }
 0x228   :  { %v328_v49 = vperm.slane %v320_v45, %v2115_v22  ;;  %v345_v50 = vrot.slane %v340_v41, 4  ;;  %v336_v51 = vperm.slane %v330_v47, %v2115_v22  ;;  %v385_v54 = vrot.slane %v364_v43, 4 }
 0x229   :  { %v318_v53 = vsel %vm183_vm8, %v317_v46, %v299_v26  ;;  %v371_v56 = vrot.slane %v359_v42, 4  ;;  %v383_v61 = vrot.slane %v370_v48, 4  ;;  %v374_v5 = vsel %vm183_vm8, %v359_v42, %v373_v52 }
 0x22a   :  { %v2188_v62 = vsel %vm183_vm8, %v345_v50, %v328_v49  ;;  %v324_v63 = vperm.slane %v318_v53, %v2115_v22  ;;  %v341_v0 = vrot.slane %v336_v51, 4  ;;  %v347_v3 = vrot.slane %v328_v49, 4 }
 0x22b   :  { %v386_v6 = vsel %vm183_vm8, %v370_v48, %v385_v54  ;;  %v372_v8 = vsel %vm183_vm8, %v371_v56, %v353_v35  ;;  %v384_v9 = vsel %vm183_vm8, %v383_v61, %v364_v43  ;;  %v382_v14 = vperm.slane %v374_v5, %v2115_v22 }
 0x22c   :  { %v2196_v11 = vsel %vm183_vm8, %v341_v0, %v324_v63  ;;  %v2199_v12 = vsel %vm183_vm8, %v340_v41, %v347_v3  ;;  %v343_v13 = vrot.slane %v324_v63, 4  ;;  %v394_v15 = vperm.slane %v386_v6, %v2115_v22 }
 0x22d   :  { %v378_v16 = vperm.slane %v372_v8, %v2115_v22  ;;  %v390_v55 = vperm.slane %v384_v9, %v2115_v22  ;;  %v401_v17 = vrot.slane %v382_v14, 4  ;;  %v485_v33 = vrot.slane %v406_v28, 4 }
 0x22e   :  { %v2206_v57 = vsel %vm183_vm8, %v336_v51, %v343_v13  ;;  %v399_v18 = vrot.slane %v394_v15, 4  ;;  %v429_v37 = vrot.slane %v404_v29, 4 }
 0x22f   :  { %v395_v19 = vrot.slane %v390_v55, 4  ;;  %v397_v21 = vrot.slane %v378_v16, 4  ;;  %v2209_v23 = vsel %vm183_vm8, %v394_v15, %v401_v17 }
 0x230   :  { %v2212_v24 = vsel %vm183_vm8, %v399_v18, %v382_v14 }
 0x231   :  { %v2215_v26 = vsel %vm183_vm8, %v395_v19, %v378_v16  ;;  %v2218_v27 = vsel %vm183_vm8, %v390_v55, %v397_v21 }
 0x25f   :  { %v414_v30 = vpop.permute.xlu2 %413 }
 0x260   :  { %v483_v31 = vrot.slane %v414_v30, 4  ;;  %v486_v34 = vsel %vm183_vm8, %v414_v30, %v485_v33 }
 0x261   :  { %v494_v38 = vperm.slane %v486_v34, %v2087_v2 }
 0x262   :  { %v484_v35 = vsel %vm183_vm8, %v483_v31, %v406_v28 }
 0x263   :  { %v490_v39 = vperm.slane %v484_v35, %v2087_v2  ;;  %v521_v46 = vrot.slane %v494_v38, 4 }
 0x265   :  { %v509_v48 = vrot.slane %v490_v39, 4 }
 0x267   :  { %v408_v56 = vpop.permute.xlu2 %407 }
 0x268   :  { %v441_v13 = vrot.slane %v408_v56, 4 }
 0x26f   :  { %v410_v32 = vpop.permute.xlu0 %409 }
 0x270   :  { %v497_v40 = vrot.slane %v410_v32, 4 }
 0x27f   :  { %v412_v36 = vpop.permute.xlu1 %411 }
 0x280   :  { %v427_v41 = vrot.slane %v412_v36, 4  ;;  %v430_v42 = vsel %vm183_vm8, %v412_v36, %v429_v37 }
 0x281   :  { %v438_v49 = vperm.slane %v430_v42, %v2087_v2 }
 0x282   :  { %v428_v51 = vsel %vm183_vm8, %v427_v41, %v404_v29 }
 0x283   :  { %v434_v5 = vperm.slane %v428_v51, %v2087_v2  ;;  %v465_v14 = vrot.slane %v438_v49, 4 }
 0x285   :  { %v453_v31 = vrot.slane %v434_v5, 4 }
 0x286   :  { %v418_v43 = vpop.permute.xlu0 %417 }
 0x287   :  { %v495_v44 = vrot.slane %v418_v43, 4  ;;  %v498_v45 = vsel %vm183_vm8, %v418_v43, %v497_v40 }
 0x288   :  { %v506_v47 = vperm.slane %v498_v45, %v2087_v2 }
 0x289   :  { %v496_v50 = vsel %vm183_vm8, %v495_v44, %v410_v32 }
 0x28a   :  { %v502_v52 = vperm.slane %v496_v50, %v2087_v2  ;;  %v519_v53 = vrot.slane %v506_v47, 4  ;;  %v522_v54 = vsel %vm183_vm8, %v506_v47, %v521_v46 }
 0x28b   :  { %v530_v61 = vperm.slane %v522_v54, %v2115_v22 }
 0x28c   :  { %v507_v63 = vrot.slane %v502_v52, 4  ;;  %v510_v0 = vsel %vm183_vm8, %v502_v52, %v509_v48  ;;  %v520_v3 = vsel %vm183_vm8, %v519_v53, %v494_v38 }
 0x28d   :  { %v518_v6 = vperm.slane %v510_v0, %v2115_v22  ;;  %v526_v8 = vperm.slane %v520_v3, %v2115_v22  ;;  %v537_v9 = vrot.slane %v530_v61, 4 }
 0x28e   :  { %v508_v15 = vsel %vm183_vm8, %v507_v63, %v490_v39  ;;  %v416_v16 = vpop.permute.xlu0 %415 }
 0x28f   :  { %v514_v55 = vperm.slane %v508_v15, %v2115_v22  ;;  %v533_v17 = vrot.slane %v518_v6, 4  ;;  %v535_v18 = vrot.slane %v526_v8, 4  ;;  %v538_v19 = vsel %vm183_vm8, 0.0, %v537_v9 }
 0x290   :  { %v604_v21 = vsel %vm183_vm8, %v537_v9, %v526_v8  ;;  %v609_v28 = vrot.slane %v538_v19, 4  ;;  %v439_v29 = vrot.slane %v416_v16, 4  ;;  %v442_v30 = vsel %vm183_vm8, %v416_v16, %v441_v13 }
 0x291   :  { %v534_v32 = vsel %vm183_vm8, 0.0, %v533_v17  ;;  %v536_v33 = vsel %vm183_vm8, 0.0, %v535_v18  ;;  %v450_v34 = vperm.slane %v442_v30, %v2087_v2  ;;  %v608_v36 = vperm.slane %v604_v21, %v2087_v2 }
 0x292   :  { %v598_v35 = vrot.slane %v534_v32, 4  ;;  %v440_v37 = vsel %vm183_vm8, %v439_v29, %v408_v56  ;;  %v531_v38 = vrot.slane %v514_v55, 4  ;;  %v593_v42 = vsel %vm183_vm8, %v533_v17, %v514_v55 }
 0x293   :  { %v446_v39 = vperm.slane %v440_v37, %v2087_v2  ;;  %v463_v40 = vrot.slane %v450_v34, 4  ;;  %v466_v41 = vsel %vm183_vm8, %v450_v34, %v465_v14  ;;  %v610_v45 = vsel %vm183_vm8, %v609_v28, %v536_v33 }
 0x294   :  { %v474_v43 = vperm.slane %v466_v41, %v2115_v22  ;;  %v532_v44 = vsel %vm183_vm8, 0.0, %v531_v38  ;;  %v597_v54 = vperm.slane %v593_v42, %v2087_v2  ;;  %v614_v63 = vperm.slane %v610_v45, %v2087_v2 }
 0x295   :  { %v451_v46 = vrot.slane %v446_v39, 4  ;;  %v454_v47 = vsel %vm183_vm8, %v446_v39, %v453_v31  ;;  %v464_v48 = vsel %vm183_vm8, %v463_v40, %v438_v49  ;;  %v599_v50 = vsel %vm183_vm8, %v598_v35, %v532_v44 }
 0x296   :  { %v462_v51 = vperm.slane %v454_v47, %v2115_v22  ;;  %v470_v52 = vperm.slane %v464_v48, %v2115_v22  ;;  %v481_v53 = vrot.slane %v474_v43, 4  ;;  %v603_v61 = vperm.slane %v599_v50, %v2087_v2 }
 0x297   :  { %v452_v56 = vsel %vm183_vm8, %v451_v46, %v434_v5  ;;  %v629_v0 = vrot.slane %v608_v36, 4  ;;  %v617_v17 = vrot.slane %v597_v54, 4  ;;  %v627_v28 = vrot.slane %v614_v63, 4 }
 0x298   :  { %v458_v3 = vperm.slane %v452_v56, %v2115_v22  ;;  %v477_v6 = vrot.slane %v462_v51, 4  ;;  %v479_v49 = vrot.slane %v470_v52, 4  ;;  %v482_v8 = vsel %vm183_vm8, 0.0, %v481_v53 }
 0x299   :  { %v550_v9 = vsel %vm183_vm8, %v481_v53, %v470_v52  ;;  %v555_v13 = vrot.slane %v482_v8, 4  ;;  %v630_v18 = vsel %vm183_vm8, %v614_v63, %v629_v0  ;;  %v615_v19 = vrot.slane %v603_v61, 4 }
 0x29a   :  { %v475_v14 = vrot.slane %v458_v3, 4  ;;  %v478_v15 = vsel %vm183_vm8, 0.0, %v477_v6  ;;  %v480_v5 = vsel %vm183_vm8, 0.0, %v479_v49  ;;  %v554_v16 = vperm.slane %v550_v9, %v2087_v2 }
 0x29b   :  { %v544_v55 = vrot.slane %v478_v15, 4  ;;  %v638_v21 = vperm.slane %v630_v18, %v2115_v22  ;;  %v539_v30 = vsel %vm183_vm8, %v477_v6, %v458_v3  ;;  %v618_v31 = vsel %vm183_vm8, %v603_v61, %v617_v17 }
 0x29c   :  { %v476_v29 = vsel %vm183_vm8, 0.0, %v475_v14  ;;  %v616_v32 = vsel %vm183_vm8, %v615_v19, %v597_v54  ;;  %v543_v33 = vperm.slane %v539_v30, %v2087_v2  ;;  %v626_v35 = vperm.slane %v618_v31, %v2115_v22 }
 0x29d   :  { %v545_v34 = vsel %vm183_vm8, %v544_v55, %v476_v29  ;;  %v643_v37 = vrot.slane %v638_v21, 4  ;;  %v622_v38 = vperm.slane %v616_v32, %v2115_v22  ;;  %v628_v39 = vsel %vm183_vm8, %v627_v28, %v608_v36 }
 0x29e   :  { %v634_v40 = vperm.slane %v628_v39, %v2115_v22  ;;  %v549_v41 = vperm.slane %v545_v34, %v2087_v2  ;;  %v556_v42 = vsel %vm183_vm8, %v555_v13, %v480_v5  ;;  %v563_v43 = vrot.slane %v543_v33, 4 }
 0x29f   :  { %v644_v44 = vsel %vm183_vm8, %v643_v37, %v626_v35  ;;  %v645_v45 = vrot.slane %v626_v35, 4  ;;  %v641_v46 = vrot.slane %v622_v38, 4  ;;  %v560_v47 = vperm.slane %v556_v42, %v2087_v2 }
 0x2a0   :  { %1816 = vmatpush.xpose.msk.msra.mxu3 %vm936_vm9, %v644_v44  ;;  %v639_v48 = vrot.slane %v634_v40, 4  ;;  %v564_v50 = vsel %vm183_vm8, %v549_v41, %v563_v43  ;;  %v575_v51 = vrot.slane %v554_v16, 4  ;;  %v561_v36 = vrot.slane %v549_v41, 4 }
 0x2a1   :  { %v646_v52 = vsel %vm183_vm8, %v638_v21, %v645_v45  ;;  %v642_v53 = vsel %vm183_vm8, %v634_v40, %v641_v46  ;;  %v572_v54 = vperm.slane %v564_v50, %v2115_v22  ;;  %v573_v56 = vrot.slane %v560_v47, 4 }
 0x2a2   :  { %v640_v61 = vsel %vm183_vm8, %v639_v48, %v622_v38  ;;  %1820 = vmatpush.xpose.msk.msrb.mxu0 %vm936_vm9, %v646_v52  ;;  %1812 = vmatpush.xpose.msk.msra.mxu2 %vm936_vm9, %v642_v53  ;;  %v576_v63 = vsel %vm183_vm8, %v560_v47, %v575_v51  ;;  %v562_v0 = vsel %vm183_vm8, %v561_v36, %v543_v33  ;;  %v2016_v21 = vmov -1e+30   ;;  %v2343_v53 = vpop.permute.xlu0 %1855 }
 0x2a3   :  { %1808 = vmatpush.xpose.msk.msra.mxu1 %vm936_vm9, %v640_v61  ;;  %v584_v3 = vperm.slane %v576_v63, %v2115_v22  ;;  %v568_v6 = vperm.slane %v562_v0, %v2115_v22  ;;  %v574_v49 = vsel %vm183_vm8, %v573_v56, %v554_v16  ;;  %v591_v8 = vrot.slane %v572_v54, 4 }
 0x2a4   :  { %v580_v9 = vperm.slane %v574_v49, %v2115_v22  ;;  %v1869_v52 = vpack.i.bf16 %v2120_v25, %v2113_v20 }
 0x2a5   :  { %v589_v13 = vrot.slane %v584_v3, 4  ;;  %v592_v14 = vsel %vm183_vm8, %v584_v3, %v591_v8  ;;  %v587_v15 = vrot.slane %v568_v6, 4 }
 0x2a6   :  { %v585_v5 = vrot.slane %v580_v9, 4  ;;  %1821 = vmatpush.xpose.msk.msrb.mxu0 %vm936_vm9, %v592_v14 }
 0x2a7   :  { %v590_v55 = vsel %vm183_vm8, %v589_v13, %v572_v54  ;;  %v588_v17 = vsel %vm183_vm8, %v580_v9, %v587_v15 }
 0x2a8   :  { %1817 = vmatpush.xpose.msk.msra.mxu3 %vm936_vm9, %v590_v55  ;;  %v586_v18 = vsel %vm183_vm8, %v585_v5, %v568_v6  ;;  %1813 = vmatpush.xpose.msk.msra.mxu2 %vm936_vm9, %v588_v17 }
 0x2a9   :  { %1809 = vmatpush.xpose.msk.msra.mxu1 %vm936_vm9, %v586_v18  ;;  %1822 = vmatmul.msk.f32.vlgmr.msrb.gmra.mxu0 %vm936_vm9, %v2199_v12  ;;  %v891_v12 = vlaneseq }
 0x2ab   :  { %1818 = vmatmul.msk.f32.vlgmr.msra.gmra.mxu3 %vm936_vm9, %v2188_v62  ;;  %1814 = vmatmul.msk.f32.vlgmr.msra.gmra.mxu2 %vm936_vm9, %v2206_v57  ;;  %v892_v62 = vshrl.u32 %v891_v12, 7  ;;  %v895_v16 = vand.u32 127, %v891_v12 }
 0x2ac   :  { %1810 = vmatmul.msk.f32.vlgmr.msra.gmra.mxu1 %vm936_vm9, %v2196_v11 }
 0x2ad   :  { %v900_v19 = vand.u32 1, %v892_v62  ;;  %v924_v57 = vand.u32 1, %v895_v16  ;;  %v893_v29 = vadd.s32 8, %v892_v62 }
 0x2af   :  { %vm932_vm10 = vcmp.eq.s32.totalorder %v900_v19, %v924_v57 }
 0x2b0   :  { %v934_v11 = vsel %vm932_vm10, 0.0, %v2016_v21 }
 0x2b1   :  { %1823 = vmatmul.msk.f32.gmra.mxu0 %vm936_vm9, %v2209_v23 }
 0x2b3   :  { %1819 = vmatmul.msk.f32.gmra.mxu3 %vm936_vm9, %v2212_v24  ;;  %1815 = vmatmul.msk.f32.gmra.mxu2 %vm936_vm9, %v2218_v27  ;;  %v907_v27 = vand.u32 1, %v893_v29 }
 0x2b4   :  { %1811 = vmatmul.msk.f32.gmra.mxu1 %vm936_vm9, %v2215_v26 }
 0x2b5   :  { %vm933_vm12 = vcmp.eq.s32.totalorder %v907_v27, %v924_v57 }
 0x2b6   :  { %v935_v38 = vsel %vm933_vm12, 0.0, %v2016_v21 }
 0x326   :  { %v1071_v28 = vpop.f32.mrf.mxu0 }
 0x327   :  { %v1072_v23 = vadd.f32 %v1071_v28, %v934_v11 }
 0x329   :  { %v966_v30 = vpop.f32.mrf.mxu1  ;;  %v1096_v24 = vsel %vm1077_vm11, %v1072_v23, -inf }
 0x32a   :  { %v967_v31 = vadd.f32 %v966_v30, %v934_v11  ;;  %1097 = vmax.xlane.f32.xlu1 %v1096_v24 }
 0x32c   :  { %v1078_v26 = vsel %vm1077_vm11, %v967_v31, -inf }
 0x32d   :  { %1079 = vmax.xlane.f32.xlu0 %v1078_v26 }
 0x32e   :  { %v1036_v32 = vpop.f32.mrf.mxu3  ;;  %v1001_v34 = vpop.f32.mrf.mxu2 }
 0x32f   :  { %v1037_v33 = vadd.f32 %v1036_v32, %v934_v11  ;;  %v1002_v35 = vadd.f32 %v1001_v34, %v934_v11  ;;  %v1074_v41 = vpop.f32.mrf.mxu0  ;;  %v1857_v11 = vunpack.i.l.bf16 %v2343_v53 }
 0x330   :  { %v1075_v43 = vadd.f32 %v1074_v41, %v935_v38 }
 0x331   :  { %v1090_v37 = vsel %vm1077_vm11, %v1037_v33, -inf  ;;  %v969_v39 = vpop.f32.mrf.mxu1  ;;  %v1084_v40 = vsel %vm1077_vm11, %v1002_v35, -inf  ;;  %v729_v24 = vrot.slane %v1857_v11, 4 }
 0x332   :  { %1091 = vmax.xlane.f32.xlu2 %v1090_v37  ;;  %1085 = vmax.xlane.f32.xlu1 %v1084_v40  ;;  %v970_v42 = vadd.f32 %v969_v39, %v935_v38  ;;  %v1099_v48 = vsel %vm1077_vm11, %v1075_v43, -inf }
 0x334   :  { %v1081_v46 = vsel %vm1077_vm11, %v970_v42, -inf }
 0x336   :  { %v1004_v44 = vpop.f32.mrf.mxu2  ;;  %v1039_v47 = vpop.f32.mrf.mxu3 }
 0x337   :  { %v1005_v45 = vadd.f32 %v1004_v44, %v935_v38  ;;  %v1040_v51 = vadd.f32 %v1039_v47, %v935_v38 }
 0x339   :  { %v1087_v50 = vsel %vm1077_vm11, %v1005_v45, -inf  ;;  %v1093_v36 = vsel %vm1077_vm11, %v1040_v51, -inf }
 0x33a   :  { %1082 = vmax.xlane.f32.xlu2 %v1081_v46  ;;  %1100 = vmax.xlane.f32.xlu1 %v1099_v48 }
 0x33b   :  { %1088 = vmax.xlane.f32.xlu0 %v1087_v50 }
 0x342   :  { %1094 = vmax.xlane.f32.xlu2 %v1093_v36 }
 0x34f   :  { %1870 = vrot.lane.b32.xlu0 %v1869_v52, %s2015_s23 }
 0x353   :  { %1865 = vrot.lane.b32.xlu1 %v1864_v7, %s2015_s23 }
 0x35a   :  { %1860 = vrot.lane.b32.xlu2 %v1859_v60, %s2015_s23 }
 0x39d   :  { %v1098_v54 = vpop.xlane.xlu1 %1097 }
 0x39e   :  { %v1108_v49 = vsub.f32 %v1072_v23, %v1098_v54 }
 0x3a0   :  { %v1080_v56 = vpop.xlane.xlu0 %1079  ;;  %v1122_v59 = vmul.f32 1.442695, %v1108_v49 }
 0x3a1   :  { %v1102_v61 = vsub.f32 %v967_v31, %v1080_v56 }
 0x3a3   :  { %v1110_v63 = vmul.f32 1.442695, %v1102_v61 }
 0x3a5   :  { %1888 = vpow2.f32 %v1110_v63  ;;  %v1092_v20 = vpop.xlane.xlu2 %1091  ;;  %v1086_v0 = vpop.xlane.xlu1 %1085 }
 0x3a6   :  { %v1106_v25 = vsub.f32 %v1037_v33, %v1092_v20  ;;  %v1104_v3 = vsub.f32 %v1002_v35, %v1086_v0  ;;  %v1858_v35 = vunpack.i.h.bf16 %v2343_v53 }
 0x3a8   :  { %v1118_v6 = vmul.f32 1.442695, %v1106_v25  ;;  %v1114_v1 = vmul.f32 1.442695, %v1104_v3  ;;  %v673_v36 = vrot.slane %v1858_v35, 4 }
 0x3aa   :  { %1890 = vpow2.f32 %v1118_v6 }
 0x3ab   :  { %v2345_v4 = vpop.eup %1888  ;;  %1892 = vpow2.f32 %v1114_v1 }
 0x3ac   :  { %v1126_v58 = vsel %vm1077_vm11, %v2345_v4, 0.0  ;;  %1894 = vpow2.f32 %v1122_v59 }
 0x3ad   :  { %v1083_v60 = vpop.xlane.xlu2 %1082  ;;  %1127 = vadd.xlane.f32.xlu1 %v1126_v58  ;;  %v1101_v7 = vpop.xlane.xlu1 %1100 }
 0x3ae   :  { %v1089_v8 = vpop.xlane.xlu0 %1088  ;;  %v1109_v15 = vsub.f32 %v1075_v43, %v1101_v7  ;;  %v1103_v19 = vsub.f32 %v970_v42, %v1083_v60 }
 0x3af   :  { %v1105_v9 = vsub.f32 %v1005_v45, %v1089_v8 }
 0x3b0   :  { %v2349_v13 = vpop.eup %1890  ;;  %v1124_v18 = vmul.f32 1.442695, %v1109_v15  ;;  %v1112_v23 = vmul.f32 1.442695, %v1103_v19 }
 0x3b1   :  { %v2351_v14 = vpop.eup %1892  ;;  %v1116_v5 = vmul.f32 1.442695, %v1105_v9  ;;  %v1138_v55 = vsel %vm1077_vm11, %v2349_v13, 0.0 }
 0x3b2   :  { %1139 = vadd.xlane.f32.xlu2 %v1138_v55  ;;  %v1132_v17 = vsel %vm1077_vm11, %v2351_v14, 0.0  ;;  %v2357_v16 = vpop.eup %1894 }
 0x3b3   :  { %1133 = vadd.xlane.f32.xlu0 %v1132_v17  ;;  %1896 = vpow2.f32 %v1116_v5  ;;  %v1144_v28 = vsel %vm1077_vm11, %v2357_v16, 0.0 }
 0x3b4   :  { %1898 = vpow2.f32 %v1124_v18 }
 0x3b5   :  { %v1095_v12 = vpop.xlane.xlu2 %1094 }
 0x3b6   :  { %v1107_v62 = vsub.f32 %v1040_v51, %v1095_v12 }
 0x3b8   :  { %v1120_v57 = vmul.f32 1.442695, %v1107_v62 }
 0x3b9   :  { %v2359_v21 = vpop.eup %1896 }
 0x3ba   :  { %1900 = vpow2.f32 %v1120_v57  ;;  %v1135_v29 = vsel %vm1077_vm11, %v2359_v21, 0.0  ;;  %v2366_v26 = vpop.eup %1898 }
 0x3bb   :  { %1145 = vadd.xlane.f32.xlu0 %v1144_v28  ;;  %1136 = vadd.xlane.f32.xlu1 %v1135_v29  ;;  %1902 = vpow2.f32 %v1112_v23  ;;  %v1147_v43 = vsel %vm1077_vm11, %v2366_v26, 0.0 }
 0x3bd   :  { %v1861_v30 = vpop.permute.xlu2 %1860 }
 0x3be   :  { %v1863_v31 = vunpack.i.h.bf16 %v1861_v30  ;;  %v1862_v27 = vunpack.i.l.bf16 %v1861_v30 }
 0x3c0   :  { %v2368_v32 = vpop.eup %1900  ;;  %v727_v33 = vrot.slane %v1863_v31, 4  ;;  %v730_v34 = vsel %vm183_vm8, %v1863_v31, %v729_v24  ;;  %v741_v41 = vrot.slane %v1862_v27, 4 }
 0x3c1   :  { %v738_v37 = vperm.slane %v730_v34, %v2087_v2  ;;  %v1141_v38 = vsel %vm1077_vm11, %v2368_v32, 0.0  ;;  %v1871_v39 = vpop.permute.xlu0 %1870  ;;  %v2380_v48 = vpop.eup %1902 }
 0x3c2   :  { %v728_v40 = vsel %vm183_vm8, %v727_v33, %v1857_v11  ;;  %1142 = vadd.xlane.f32.xlu2 %v1141_v38  ;;  %v1872_v42 = vunpack.i.l.bf16 %v1871_v39  ;;  %v1873_v45 = vunpack.i.h.bf16 %v1871_v39  ;;  %v1129_v6 = vsel %vm1077_vm11, %v2380_v48, 0.0 }
 0x3c3   :  { %v734_v44 = vperm.slane %v728_v40, %v2087_v2  ;;  %1148 = vadd.xlane.f32.xlu0 %v1147_v43  ;;  %v765_v50 = vrot.slane %v738_v37, 4 }
 0x3c4   :  { %v739_v46 = vrot.slane %v1872_v42, 4  ;;  %v742_v47 = vsel %vm183_vm8, %v1872_v42, %v741_v41  ;;  %v683_v25 = vrot.slane %v1873_v45, 4 }
 0x3c5   :  { %v750_v51 = vperm.slane %v742_v47, %v2087_v2  ;;  %v753_v52 = vrot.slane %v734_v44, 4  ;;  %v1866_v54 = vpop.permute.xlu1 %1865 }
 0x3c6   :  { %v740_v53 = vsel %vm183_vm8, %v739_v46, %v1862_v27  ;;  %v1868_v20 = vunpack.i.h.bf16 %v1866_v54  ;;  %v1867_v3 = vunpack.i.l.bf16 %v1866_v54 }
 0x3c7   :  { %v746_v56 = vperm.slane %v740_v53, %v2087_v2  ;;  %v763_v61 = vrot.slane %v750_v51, 4  ;;  %v766_v63 = vsel %vm183_vm8, %v750_v51, %v765_v50 }
 0x3c8   :  { %v774_v0 = vperm.slane %v766_v63, %v2115_v22  ;;  %v671_v59 = vrot.slane %v1868_v20, 4  ;;  %v674_v9 = vsel %vm183_vm8, %v1868_v20, %v673_v36  ;;  %v684_v17 = vsel %vm183_vm8, %v683_v25, %v1867_v3 }
 0x3c9   :  { %v751_v49 = vrot.slane %v746_v56, 4  ;;  %v754_v1 = vsel %vm183_vm8, %v746_v56, %v753_v52  ;;  %v764_v58 = vsel %vm183_vm8, %v763_v61, %v738_v37  ;;  %v682_v55 = vperm.slane %v674_v9, %v2087_v2 }
 0x3ca   :  { %v762_v60 = vperm.slane %v754_v1, %v2115_v22  ;;  %v770_v7 = vperm.slane %v764_v58, %v2115_v22  ;;  %v781_v8 = vrot.slane %v774_v0, 4  ;;  %1130 = vadd.xlane.f32.xlu2 %v1129_v6  ;;  %v672_v5 = vsel %vm183_vm8, %v671_v59, %v1858_v35 }
 0x3cb   :  { %v752_v15 = vsel %vm183_vm8, %v751_v49, %v734_v44  ;;  %v678_v11 = vperm.slane %v672_v5, %v2087_v2  ;;  %v709_v28 = vrot.slane %v682_v55, 4  ;;  %v685_v23 = vrot.slane %v1867_v3, 4 }
 0x3cc   :  { %v758_v18 = vperm.slane %v752_v15, %v2115_v22  ;;  %v777_v12 = vrot.slane %v762_v60, 4  ;;  %v779_v62 = vrot.slane %v770_v7, 4  ;;  %v782_v19 = vsel %vm183_vm8, 0.0, %v781_v8 }
 0x3cd   :  { %v853_v57 = vrot.slane %v782_v19, 4  ;;  %v690_v29 = vperm.slane %v684_v17, %v2087_v2  ;;  %v697_v27 = vrot.slane %v678_v11, 4  ;;  %v686_v33 = vsel %vm183_vm8, %v1873_v45, %v685_v23 }
 0x3ce   :  { %v775_v30 = vrot.slane %v758_v18, 4  ;;  %v778_v24 = vsel %vm183_vm8, 0.0, %v777_v12  ;;  %v780_v31 = vsel %vm183_vm8, 0.0, %v779_v62  ;;  %v837_v34 = vsel %vm183_vm8, %v777_v12, %v758_v18 }
 0x3cf   :  { %v842_v35 = vrot.slane %v778_v24, 4  ;;  %v694_v37 = vperm.slane %v686_v33, %v2087_v2  ;;  %v695_v38 = vrot.slane %v690_v29, 4  ;;  %v841_v40 = vperm.slane %v837_v34, %v2087_v2 }
 0x3d0   :  { %v776_v39 = vsel %vm183_vm8, 0.0, %v775_v30  ;;  %v698_v41 = vsel %vm183_vm8, %v690_v29, %v697_v27  ;;  %v848_v43 = vsel %vm183_vm8, %v781_v8, %v770_v7  ;;  %v854_v44 = vsel %vm183_vm8, %v853_v57, %v780_v31 }
 0x3d1   :  { %v843_v42 = vsel %vm183_vm8, %v842_v35, %v776_v39  ;;  %v696_v45 = vsel %vm183_vm8, %v695_v38, %v678_v11  ;;  %v706_v46 = vperm.slane %v698_v41, %v2115_v22  ;;  %v707_v47 = vrot.slane %v694_v37, 4 }
 0x3d2   :  { %v710_v50 = vsel %vm183_vm8, %v694_v37, %v709_v28  ;;  %v702_v51 = vperm.slane %v696_v45, %v2115_v22  ;;  %v847_v52 = vperm.slane %v843_v42, %v2087_v2  ;;  %v852_v53 = vperm.slane %v848_v43, %v2087_v2 }
 0x3d3   :  { %v718_v36 = vperm.slane %v710_v50, %v2115_v22  ;;  %v708_v54 = vsel %vm183_vm8, %v707_v47, %v682_v55  ;;  %v721_v56 = vrot.slane %v706_v46, 4  ;;  %v858_v61 = vperm.slane %v854_v44, %v2087_v2 }
 0x3d4   :  { %v861_v63 = vrot.slane %v841_v40, 4  ;;  %v714_v20 = vperm.slane %v708_v54, %v2115_v22  ;;  %v873_v0 = vrot.slane %v852_v53, 4  ;;  %v859_v3 = vrot.slane %v847_v52, 4 }
 0x3d5   :  { %v725_v25 = vrot.slane %v718_v36, 4  ;;  %v722_v6 = vsel %vm183_vm8, 0.0, %v721_v56  ;;  %v871_v1 = vrot.slane %v858_v61, 4  ;;  %v719_v58 = vrot.slane %v702_v51, 4 }
 0x3d6   :  { %v862_v49 = vsel %vm183_vm8, %v847_v52, %v861_v63  ;;  %v723_v59 = vrot.slane %v714_v20, 4  ;;  %v788_v7 = vrot.slane %v722_v6, 4  ;;  %v874_v15 = vsel %vm183_vm8, %v858_v61, %v873_v0 }
 0x3d7   :  { %v726_v60 = vsel %vm183_vm8, 0.0, %v725_v25  ;;  %v870_v8 = vperm.slane %v862_v49, %v2115_v22  ;;  %v860_v5 = vsel %vm183_vm8, %v859_v3, %v841_v40  ;;  %v872_v55 = vsel %vm183_vm8, %v871_v1, %v852_v53 }
 0x3d8   :  { %v799_v9 = vrot.slane %v726_v60, 4  ;;  %v882_v17 = vperm.slane %v874_v15, %v2115_v22  ;;  %v866_v12 = vperm.slane %v860_v5, %v2115_v22  ;;  %v878_v62 = vperm.slane %v872_v55, %v2115_v22 }
 0x3d9   :  { %v889_v18 = vrot.slane %v870_v8, 4  ;;  %v720_v19 = vsel %vm183_vm8, 0.0, %v719_v58  ;;  %v724_v57 = vsel %vm183_vm8, 0.0, %v723_v59  ;;  %v783_v11 = vsel %vm183_vm8, %v721_v56, %v702_v51 }
 0x3da   :  { %v794_v28 = vsel %vm183_vm8, %v725_v25, %v714_v20  ;;  %v887_v23 = vrot.slane %v882_v17, 4  ;;  %v883_v29 = vrot.slane %v878_v62, 4  ;;  %v885_v24 = vrot.slane %v866_v12, 4 }
 0x3db   :  { %v890_v30 = vsel %vm183_vm8, %v882_v17, %v889_v18  ;;  %v787_v31 = vperm.slane %v783_v11, %v2087_v2  ;;  %v789_v27 = vsel %vm183_vm8, %v788_v7, %v720_v19  ;;  %v798_v33 = vperm.slane %v794_v28, %v2087_v2 }
 0x3dc   :  { %1377 = vmatpush.msra.mxu0 %v890_v30  ;;  %v800_v34 = vsel %vm183_vm8, %v799_v9, %v724_v57  ;;  %v888_v35 = vsel %vm183_vm8, %v887_v23, %v870_v8  ;;  %v884_v37 = vsel %vm183_vm8, %v883_v29, %v866_v12  ;;  %v886_v38 = vsel %vm183_vm8, %v878_v62, %v885_v24 }
 0x3dd   :  { %v793_v39 = vperm.slane %v789_v27, %v2087_v2  ;;  %1348 = vmatpush.msrb.mxu3 %v888_v35  ;;  %1290 = vmatpush.msrb.mxu1 %v884_v37  ;;  %v804_v40 = vperm.slane %v800_v34, %v2087_v2  ;;  %v807_v41 = vrot.slane %v787_v31, 4  ;;  %v819_v42 = vrot.slane %v798_v33, 4 }
 0x3de   :  { %1319 = vmatpush.msrb.mxu2 %v886_v38 }
 0x3df   :  { %v805_v43 = vrot.slane %v793_v39, 4  ;;  %v808_v44 = vsel %vm183_vm8, %v793_v39, %v807_v41  ;;  %v820_v45 = vsel %vm183_vm8, %v804_v40, %v819_v42  ;;  %v817_v46 = vrot.slane %v804_v40, 4 }
 0x3e0   :  { %v816_v47 = vperm.slane %v808_v44, %v2115_v22  ;;  %v828_v50 = vperm.slane %v820_v45, %v2115_v22 }
 0x3e1   :  { %v806_v51 = vsel %vm183_vm8, %v805_v43, %v787_v31  ;;  %v818_v52 = vsel %vm183_vm8, %v817_v46, %v798_v33 }
 0x3e2   :  { %v812_v36 = vperm.slane %v806_v51, %v2115_v22  ;;  %v833_v53 = vrot.slane %v828_v50, 4  ;;  %v824_v54 = vperm.slane %v818_v52, %v2115_v22  ;;  %v835_v56 = vrot.slane %v816_v47, 4 }
 0x3e4   :  { %v831_v61 = vrot.slane %v812_v36, 4  ;;  %v834_v63 = vsel %vm183_vm8, %v833_v53, %v816_v47  ;;  %v829_v20 = vrot.slane %v824_v54, 4  ;;  %v836_v25 = vsel %vm183_vm8, %v828_v50, %v835_v56 }
 0x3e5   :  { %1349 = vmatpush.msrb.mxu3 %v834_v63  ;;  %1378 = vmatpush.msra.mxu0 %v836_v25 }
 0x3e6   :  { %v832_v0 = vsel %vm183_vm8, %v824_v54, %v831_v61  ;;  %v830_v3 = vsel %vm183_vm8, %v829_v20, %v812_v36 }
 0x3e7   :  { %1320 = vmatpush.msrb.mxu2 %v832_v0  ;;  %1291 = vmatpush.msrb.mxu1 %v830_v3 }
 0x420   :  { %v1128_v6 = vpop.xlane.xlu1 %1127 }
 0x421   :  { %1904 = vrcp.f32 %v1128_v6  ;;  %v1159_v9 = vand.u32 2147483647, %v1128_v6  ;;  %v1161_v15 = vand.u32 2147483648, %v1128_v6  ;;  %vm1155_vm14 = vweird.f32 %v1128_v6 }
 0x423   :  { %vm1160_vm1 = vcmp.eq.f32.partialorder %v1159_v9, 8.507059e+37  ;;  %v1162_v57 = vor.u32 1.1754944e-38, %v1161_v15 }
 0x425   :  { %v1140_v49 = vpop.xlane.xlu2 %1139 }
 0x426   :  { %1906 = vrcp.f32 %v1140_v49  ;;  %v1134_v1 = vpop.xlane.xlu0 %1133  ;;  %v1215_v23 = vand.u32 2147483647, %v1140_v49  ;;  %v1217_v30 = vand.u32 2147483648, %v1140_v49  ;;  %vm1211_vm3 = vweird.f32 %v1140_v49 }
 0x427   :  { %v1905_v58 = vpop.eup %1904  ;;  %1908 = vrcp.f32 %v1134_v1  ;;  %v1187_v31 = vand.u32 2147483647, %v1134_v1  ;;  %v1189_v34 = vand.u32 2147483648, %v1134_v1  ;;  %vm1183_vm7 = vweird.f32 %v1134_v1 }
 0x428   :  { %v1151_v59 = vmul.f32 %v1905_v58, %v1128_v6  ;;  %vm1156_vm13 = vweird.f32 %v1905_v58  ;;  %vm2470_vm6 = vcmp.eq.f32.partialorder %v1215_v23, 8.507059e+37  ;;  %v1218_v43 = vor.u32 1.1754944e-38, %v1217_v30 }
 0x429   :  { %vm1157_vm15 = vmor %vm1155_vm14, %vm1156_vm13  ;;  %vm2479_vm10 = vcmp.eq.f32.partialorder %v1187_v31, 8.507059e+37  ;;  %v1190_v47 = vor.u32 1.1754944e-38, %v1189_v34 }
 0x42a   :  { %v1152_v60 = vsub.f32 1.0, %v1151_v59 }
 0x42c   :  { %v1907_v7 = vpop.eup %1906  ;;  %v1153_v8 = vmul.f32 %v1905_v58, %v1152_v60 }
 0x42d   :  { %v1909_v5 = vpop.eup %1908  ;;  %v1207_v55 = vmul.f32 %v1907_v7, %v1140_v49  ;;  %vm1212_vm2 = vweird.f32 %v1907_v7 }
 0x42e   :  { %v1154_v17 = vadd.f32 %v1905_v58, %v1153_v8  ;;  %v1179_v18 = vmul.f32 %v1909_v5, %v1134_v1  ;;  %v2459_v12 = vpop.xlane.xlu0 %1145  ;;  %v2461_v19 = vpop.xlane.xlu1 %1136  ;;  %vm2466_vm4 = vmor %vm1211_vm3, %vm1212_vm2  ;;  %vm1184_vm5 = vweird.f32 %v1909_v5 }
 0x42f   :  { %v1208_v62 = vsub.f32 1.0, %v1207_v55  ;;  %1910 = vrcp.f32 %v2459_v12  ;;  %vm1185_vm12 = vmor %vm1183_vm7, %vm1184_vm5  ;;  %v1243_v51 = vand.u32 2147483647, %v2459_v12  ;;  %v1203_v36 = vand.u32 2147483648, %v2461_v19 }
 0x430   :  { %v1180_v11 = vsub.f32 1.0, %v1179_v18  ;;  %1912 = vrcp.f32 %v2461_v19  ;;  %v1158_v29 = vsel %vm1157_vm15, %v1905_v58, %v1154_v17  ;;  %v1245_v61 = vand.u32 2147483648, %v2459_v12 }
 0x431   :  { %v1209_v28 = vmul.f32 %v1907_v7, %v1208_v62  ;;  %v1163_v27 = vsel %vm1160_vm1, %v1162_v57, %v1158_v29  ;;  %v1201_v3 = vand.u32 2147483647, %v2461_v19  ;;  %vm1197_vm15 = vweird.f32 %v2461_v19 }
 0x432   :  { %v1181_v24 = vmul.f32 %v1909_v5, %v1180_v11  ;;  %v1262_v35 = vmul.f32 %v2345_v4, %v1163_v27  ;;  %vm1239_vm1 = vweird.f32 %v2459_v12  ;;  %vm1244_vm2 = vcmp.eq.f32.partialorder %v1243_v51, 8.507059e+37 }
 0x433   :  { %v1210_v33 = vadd.f32 %v1907_v7, %v1209_v28  ;;  %v1204_v58 = vor.u32 1.1754944e-38, %v1203_v36  ;;  %v1246_v59 = vor.u32 1.1754944e-38, %v1245_v61  ;;  %vm1202_vm5 = vcmp.eq.f32.partialorder %v1201_v3, 8.507059e+37 }
 0x434   :  { %v1182_v38 = vadd.f32 %v1909_v5, %v1181_v24  ;;  %1824 = vmatmul.msk.f32.vlgmr.msrb.gmra.mxu1 %vm1077_vm11, %v1262_v35 }
 0x435   :  { %v1911_v39 = vpop.eup %1910  ;;  %v2474_v41 = vpop.xlane.xlu2 %1142  ;;  %v1214_v42 = vsel %vm2466_vm4, %v1907_v7, %v1210_v33 }
 0x436   :  { %v1913_v4 = vpop.eup %1912  ;;  %v1235_v45 = vmul.f32 %v1911_v39, %v2459_v12  ;;  %1914 = vrcp.f32 %v2474_v41  ;;  %v2485_v46 = vpop.xlane.xlu0 %1148  ;;  %v1219_v53 = vsel %vm2470_vm6, %v1218_v43, %v1214_v42  ;;  %v1186_v54 = vsel %vm1185_vm12, %v1909_v5, %v1182_v38 }
 0x437   :  { %v1193_v50 = vmul.f32 %v1913_v4, %v2461_v19  ;;  %1916 = vrcp.f32 %v2485_v46  ;;  %v1266_v63 = vmul.f32 %v2349_v13, %v1219_v53  ;;  %v1191_v20 = vsel %vm2479_vm10, %v1190_v47, %v1186_v54 }
 0x438   :  { %v1236_v52 = vsub.f32 1.0, %v1235_v45  ;;  %vm1240_vm13 = vweird.f32 %v1911_v39  ;;  %v1264_v0 = vmul.f32 %v2351_v14, %v1191_v20  ;;  %vm1198_vm14 = vweird.f32 %v1913_v4 }
 0x439   :  { %v1194_v56 = vsub.f32 1.0, %v1193_v50  ;;  %1828 = vmatmul.msk.f32.vlgmr.msrb.gmra.mxu3 %vm1077_vm11, %v1266_v63  ;;  %vm1241_vm3 = vmor %vm1239_vm1, %vm1240_vm13  ;;  %v1231_v55 = vand.u32 2147483648, %v2474_v41  ;;  %v1259_v12 = vand.u32 2147483648, %v2485_v46  ;;  %v1229_v23 = vand.u32 2147483647, %v2474_v41 }
 0x43a   :  { %v1237_v25 = vmul.f32 %v1911_v39, %v1236_v52  ;;  %1826 = vmatmul.msk.f32.vlgmr.msrb.gmra.mxu2 %vm1077_vm11, %v1264_v0  ;;  %vm1199_vm4 = vmor %vm1197_vm15, %vm1198_vm14  ;;  %v1257_v29 = vand.u32 2147483647, %v2485_v46  ;;  %vm1225_vm10 = vweird.f32 %v2474_v41  ;;  %vm1253_vm12 = vweird.f32 %v2485_v46 }
 0x43b   :  { %v1195_v6 = vmul.f32 %v1913_v4, %v1194_v56  ;;  %v1232_v31 = vor.u32 1.1754944e-38, %v1231_v55  ;;  %vm1230_vm14 = vcmp.eq.f32.partialorder %v1229_v23, 8.507059e+37 }
 0x43c   :  { %v1915_v49 = vpop.eup %1914  ;;  %v1238_v1 = vadd.f32 %v1911_v39, %v1237_v25  ;;  %vm1258_vm1 = vcmp.eq.f32.partialorder %v1257_v29, 8.507059e+37 }
 0x43d   :  { %v1917_v13 = vpop.eup %1916  ;;  %v1221_v14 = vmul.f32 %v1915_v49, %v2474_v41  ;;  %v1131_v60 = vpop.xlane.xlu2 %1130  ;;  %v1196_v7 = vadd.f32 %v1913_v4, %v1195_v6  ;;  %vm1226_vm6 = vweird.f32 %v1915_v49 }
 0x43e   :  { %v1242_v8 = vsel %vm1241_vm3, %v1911_v39, %v1238_v1  ;;  %v1249_v9 = vmul.f32 %v1917_v13, %v2485_v46  ;;  %1918 = vrcp.f32 %v1131_v60  ;;  %vm1254_vm7 = vweird.f32 %v1917_v13  ;;  %vm1227_vm13 = vmor %vm1225_vm10, %vm1226_vm6 }
 0x43f   :  { %v1247_v15 = vsel %vm1244_vm2, %v1246_v59, %v1242_v8  ;;  %v1222_v5 = vsub.f32 1.0, %v1221_v14  ;;  %v1200_v17 = vsel %vm1199_vm4, %v1913_v4, %v1196_v7  ;;  %vm1255_vm15 = vmor %vm1253_vm12, %vm1254_vm7  ;;  %v1175_v40 = vand.u32 2147483648, %v1131_v60 }
 0x440   :  { %v1250_v18 = vsub.f32 1.0, %v1249_v9  ;;  %v1205_v62 = vsel %vm1202_vm5, %v1204_v58, %v1200_v17  ;;  %v1268_v57 = vmul.f32 %v2357_v16, %v1247_v15  ;;  %v1173_v4 = vand.u32 2147483647, %v1131_v60 }
 0x441   :  { %v1223_v11 = vmul.f32 %v1915_v49, %v1222_v5  ;;  %v1265_v28 = vmul.f32 %v2359_v21, %v1205_v62  ;;  %v1260_v21 = vor.u32 1.1754944e-38, %v1259_v12  ;;  %vm1169_vm3 = vweird.f32 %v1131_v60 }
 0x442   :  { %v1251_v19 = vmul.f32 %v1917_v13, %v1250_v18  ;;  %1830 = vmatmul.msk.f32.vlgmr.msra.gmra.mxu0 %vm1077_vm11, %v1268_v57  ;;  %v1176_v44 = vor.u32 1.1754944e-38, %v1175_v40  ;;  %vm1174_vm5 = vcmp.eq.f32.partialorder %v1173_v4, 8.507059e+37  ;;  %vm1634_vm6 = vcmask 195584  }
 0x443   :  { %v1224_v30 = vadd.f32 %v1915_v49, %v1223_v11  ;;  %1827 = vmatmul.msk.f32.gmra.mxu2 %vm1077_vm11, %v1265_v28 }
 0x444   :  { %v1919_v24 = vpop.eup %1918  ;;  %v1252_v16 = vadd.f32 %v1917_v13, %v1251_v19 }
 0x445   :  { %v1165_v27 = vmul.f32 %v1919_v24, %v1131_v60  ;;  %v1228_v33 = vsel %vm1227_vm13, %v1915_v49, %v1224_v30  ;;  %vm1170_vm2 = vweird.f32 %v1919_v24  ;;  %vm1752_vm13 = vcmask 523264  }
 0x446   :  { %v1233_v34 = vsel %vm1230_vm14, %v1232_v31, %v1228_v33  ;;  %v1256_v35 = vsel %vm1255_vm15, %v1917_v13, %v1252_v16  ;;  %vm1171_vm4 = vmor %vm1169_vm3, %vm1170_vm2 }
 0x447   :  { %v1166_v37 = vsub.f32 1.0, %v1165_v27  ;;  %v1267_v38 = vmul.f32 %v2368_v32, %v1233_v34  ;;  %v1261_v39 = vsel %vm1258_vm1, %v1260_v21, %v1256_v35 }
 0x448   :  { %v1269_v41 = vmul.f32 %v2366_v26, %v1261_v39 }
 0x449   :  { %v1167_v42 = vmul.f32 %v1919_v24, %v1166_v37  ;;  %1829 = vmatmul.msk.f32.gmra.mxu3 %vm1077_vm11, %v1267_v38 }
 0x44a   :  { %1831 = vmatmul.msk.f32.gmra.mxu0 %vm1077_vm11, %v1269_v41 }
 0x44b   :  { %v1168_v43 = vadd.f32 %v1919_v24, %v1167_v42 }
 0x44d   :  { %v1172_v45 = vsel %vm1171_vm4, %v1919_v24, %v1168_v43 }
 0x44e   :  { %v1177_v46 = vsel %vm1174_vm5, %v1176_v44, %v1172_v45 }
 0x44f   :  { %v1263_v32 = vmul.f32 %v2380_v48, %v1177_v46 }
 0x451   :  { %1825 = vmatmul.msk.f32.gmra.mxu1 %vm1077_vm11, %v1263_v32 }
 0x4b1   :  { %v1293_v47 = vpop.f32.mrf.mxu1 }
 0x4b2   :  { %v1388_v26 = vrot.slane %v1293_v47, 4 }
 0x4bc   :  { %v1351_v50 = vpop.f32.mrf.mxu3 }
 0x4bd   :  { %v1386_v51 = vrot.slane %v1351_v50, 4  ;;  %v1389_v36 = vsel %vm183_vm8, %v1351_v50, %v1388_v26  ;;  %v1322_v52 = vpop.f32.mrf.mxu2 }
 0x4be   :  { %v1397_v54 = vperm.slane %v1389_v36, %v2087_v2  ;;  %v1400_v56 = vrot.slane %v1322_v52, 4 }
 0x4bf   :  { %v1380_v53 = vpop.f32.mrf.mxu0  ;;  %v1387_v63 = vsel %vm183_vm8, %v1386_v51, %v1293_v47 }
 0x4c0   :  { %v1398_v61 = vrot.slane %v1380_v53, 4  ;;  %v1393_v20 = vperm.slane %v1387_v63, %v2087_v2  ;;  %v1401_v25 = vsel %vm183_vm8, %v1380_v53, %v1400_v56  ;;  %v1424_v0 = vrot.slane %v1397_v54, 4 }
 0x4c1   :  { %v1409_v6 = vperm.slane %v1401_v25, %v2087_v2 }
 0x4c2   :  { %v1399_v48 = vsel %vm183_vm8, %v1398_v61, %v1322_v52  ;;  %v1412_v49 = vrot.slane %v1393_v20, 4 }
 0x4c3   :  { %v1405_v3 = vperm.slane %v1399_v48, %v2087_v2  ;;  %v1422_v13 = vrot.slane %v1409_v6, 4  ;;  %v1425_v58 = vsel %vm183_vm8, %v1409_v6, %v1424_v0 }
 0x4c4   :  { %v1433_v14 = vperm.slane %v1425_v58, %v2115_v22 }
 0x4c5   :  { %v1410_v1 = vrot.slane %v1405_v3, 4  ;;  %v1413_v59 = vsel %vm183_vm8, %v1405_v3, %v1412_v49  ;;  %v1423_v8 = vsel %vm183_vm8, %v1422_v13, %v1397_v54 }
 0x4c6   :  { %v1421_v7 = vperm.slane %v1413_v59, %v2115_v22  ;;  %v1325_v9 = vpop.f32.mrf.mxu2  ;;  %v1429_v55 = vperm.slane %v1423_v8, %v2115_v22  ;;  %v1440_v17 = vrot.slane %v1433_v14, 4 }
 0x4c7   :  { %v1411_v60 = vsel %vm183_vm8, %v1410_v1, %v1393_v20  ;;  %v1383_v15 = vpop.f32.mrf.mxu0  ;;  %v1456_v18 = vrot.slane %v1325_v9, 4 }
 0x4c8   :  { %v1417_v5 = vperm.slane %v1411_v60, %v2115_v22  ;;  %v1436_v12 = vrot.slane %v1421_v7, 4  ;;  %v1454_v62 = vrot.slane %v1383_v15, 4  ;;  %v1438_v11 = vrot.slane %v1429_v55, 4 }
 0x4c9   :  { %v1441_v28 = vsel %vm183_vm8, 0.0, %v1440_v17  ;;  %v1509_v23 = vsel %vm183_vm8, %v1440_v17, %v1429_v55  ;;  %v1457_v21 = vsel %vm183_vm8, %v1383_v15, %v1456_v18 }
 0x4ca   :  { %v1434_v57 = vrot.slane %v1417_v5, 4  ;;  %v1437_v19 = vsel %vm183_vm8, 0.0, %v1436_v12  ;;  %v1513_v29 = vperm.slane %v1509_v23, %v2087_v2  ;;  %v1514_v30 = vrot.slane %v1441_v28, 4 }
 0x4cb   :  { %v1455_v24 = vsel %vm183_vm8, %v1454_v62, %v1325_v9  ;;  %v1439_v31 = vsel %vm183_vm8, 0.0, %v1438_v11  ;;  %v1503_v16 = vrot.slane %v1437_v19, 4  ;;  %v1465_v34 = vperm.slane %v1457_v21, %v2087_v2 }
 0x4cc   :  { %v1461_v27 = vperm.slane %v1455_v24, %v2087_v2  ;;  %v1354_v33 = vpop.f32.mrf.mxu3  ;;  %v1435_v37 = vsel %vm183_vm8, 0.0, %v1434_v57  ;;  %v1498_v38 = vsel %vm183_vm8, %v1436_v12, %v1417_v5  ;;  %v1515_v4 = vsel %vm183_vm8, %v1514_v30, %v1439_v31 }
 0x4cd   :  { %v1442_v35 = vrot.slane %v1354_v33, 4  ;;  %v1502_v41 = vperm.slane %v1498_v38, %v2087_v2  ;;  %v1504_v42 = vsel %vm183_vm8, %v1503_v16, %v1435_v37  ;;  %v1519_v32 = vperm.slane %v1515_v4, %v2087_v2 }
 0x4ce   :  { %v1466_v39 = vrot.slane %v1461_v27, 4  ;;  %v1296_v40 = vpop.f32.mrf.mxu1  ;;  %v1508_v45 = vperm.slane %v1504_v42, %v2087_v2  ;;  %v1534_v26 = vrot.slane %v1513_v29, 4  ;;  %v1478_v50 = vrot.slane %v1465_v34, 4 }
 0x4cf   :  { %v1443_v43 = vsel %vm183_vm8, %v1442_v35, %v1296_v40  ;;  %v1444_v44 = vrot.slane %v1296_v40, 4  ;;  %v1522_v47 = vrot.slane %v1502_v41, 4  ;;  %v1532_v7 = vrot.slane %v1519_v32, 4 }
 0x4d0   :  { %v1449_v46 = vperm.slane %v1443_v43, %v2087_v2  ;;  %v1520_v36 = vrot.slane %v1508_v45, 4  ;;  %v1535_v20 = vsel %vm183_vm8, %v1519_v32, %v1534_v26 }
 0x4d1   :  { %v1445_v51 = vsel %vm183_vm8, %v1354_v33, %v1444_v44  ;;  %v1523_v56 = vsel %vm183_vm8, %v1508_v45, %v1522_v47  ;;  %v1543_v6 = vperm.slane %v1535_v20, %v2115_v22  ;;  %v1533_v17 = vsel %vm183_vm8, %v1532_v7, %v1513_v29  ;;  %v51_v20 = vld [vmem:[#allocation5 + $0x28] sm:$0xff]  ;;  %v1877_v7 = vld [vmem:[#allocation5 + $0xa4] ss:$0 sm:$0xff] }
 0x4d2   :  { %v1453_v52 = vperm.slane %v1445_v51, %v2087_v2  ;;  %v1467_v53 = vsel %vm183_vm8, %v1466_v39, %v1449_v46  ;;  %v1468_v54 = vrot.slane %v1449_v46, 4  ;;  %v1531_v63 = vperm.slane %v1523_v56, %v2115_v22 }
 0x4d3   :  { %v1473_v61 = vperm.slane %v1467_v53, %v2115_v22  ;;  %v1521_v48 = vsel %vm183_vm8, %v1520_v36, %v1502_v41  ;;  %v1548_v14 = vrot.slane %v1543_v6, 4  ;;  %v1539_v11 = vperm.slane %v1533_v17, %v2115_v22 }
 0x4d4   :  { %v1469_v25 = vsel %vm183_vm8, %v1461_v27, %v1468_v54  ;;  %v1479_v0 = vsel %vm183_vm8, %v1478_v50, %v1453_v52  ;;  %v1480_v3 = vrot.slane %v1453_v52, 4  ;;  %v1550_v58 = vrot.slane %v1531_v63, 4 }
 0x4d5   :  { %v1477_v49 = vperm.slane %v1469_v25, %v2115_v22  ;;  %v1485_v1 = vperm.slane %v1479_v0, %v2115_v22  ;;  %v1490_v13 = vrot.slane %v1473_v61, 4  ;;  %v1527_v60 = vperm.slane %v1521_v48, %v2115_v22 }
 0x4d6   :  { %v1481_v59 = vsel %vm183_vm8, %v1465_v34, %v1480_v3  ;;  %v1549_v5 = vsel %vm183_vm8, %v1548_v14, %v1531_v63  ;;  %v1551_v55 = vsel %vm183_vm8, %v1543_v6, %v1550_v58  ;;  %v1544_v30 = vrot.slane %v1539_v11, 4  ;;  %v52_v63 = vld [vmem:[#allocation5 + $0x30] sm:$0xff] }
 0x4d7   :  { %v1489_v8 = vperm.slane %v1481_v59, %v2115_v22  ;;  %v1492_v9 = vrot.slane %v1477_v49, 4  ;;  %v1494_v15 = vrot.slane %v1485_v1, 4  ;;  %v1546_v18 = vrot.slane %v1527_v60, 4  ;;  %1616 = vrot.lane.b32.xlu2 %v1549_v5, %s2017_s24  ;;  %1624 = vrot.lane.b32.xlu0 %v1551_v55, %s2018_s25 }
 0x4d8   :  { %v1491_v28 = vsel %vm183_vm8, 0.0, %v1490_v13  ;;  %v1545_v37 = vsel %vm183_vm8, %v1544_v30, %v1527_v60 }
 0x4d9   :  { %v1493_v12 = vsel %vm183_vm8, 0.0, %v1492_v9  ;;  %v1496_v62 = vrot.slane %v1489_v8, 4  ;;  %v1552_v57 = vsel %vm183_vm8, %v1492_v9, %v1473_v61  ;;  %v1547_v24 = vsel %vm183_vm8, %v1539_v11, %v1546_v18  ;;  %v53_v61 = vld [vmem:[#allocation5 + $0x38] sm:$0xff] }
 0x4da   :  { %v1556_v23 = vperm.slane %v1552_v57, %v2087_v2  ;;  %v1557_v19 = vrot.slane %v1493_v12, 4  ;;  %1608 = vrot.lane.b32.xlu1 %v1547_v24, %s2006_s18  ;;  %v1495_v34 = vsel %vm183_vm8, 0.0, %v1494_v15  ;;  %1656 = vmatpush.msra.mxu1 %v53_v61  ;;  %v1924_v15 = vld [vmem:[#allocation2] sm:$0xff]  ;;  %v1925_v12 = vld [vmem:[#allocation2 + $0x8] sm:$0xff] }
 0x4db   :  { %v1497_v29 = vsel %vm183_vm8, 0.0, %v1496_v62  ;;  %v1563_v31 = vsel %vm183_vm8, %v1496_v62, %v1485_v1 }
 0x4dc   :  { %v1558_v16 = vsel %vm183_vm8, %v1557_v19, %v1491_v28  ;;  %v1567_v21 = vperm.slane %v1563_v31, %v2087_v2  ;;  %v1568_v27 = vrot.slane %v1497_v29, 4  ;;  %v1576_v33 = vrot.slane %v1556_v23, 4  ;;  %1657 = vmatpush.msra.mxu1 %v52_v63 }
 0x4dd   :  { %v1562_v35 = vperm.slane %v1558_v16, %v2087_v2 }
 0x4de   :  { %v1569_v38 = vsel %vm183_vm8, %v1568_v27, %v1495_v34  ;;  %v1588_v39 = vrot.slane %v1567_v21, 4  ;;  %1658 = vmatpush.msra.mxu1 %v51_v20  ;;  %v57_v27 = vld [vmem:[#allocation5 + $0x58] sm:$0xff]  ;;  %v55_v34 = vld [vmem:[#allocation5 + $0x48] sm:$0xff] }
 0x4df   :  { %v1573_v40 = vperm.slane %v1569_v38, %v2087_v2  ;;  %v1577_v41 = vsel %vm183_vm8, %v1562_v35, %v1576_v33  ;;  %v1574_v42 = vrot.slane %v1562_v35, 4  ;;  %1738 = vmatpush.msra.mxu2 %v57_v27  ;;  %v56_v33 = vld [vmem:[#allocation5 + $0x50] sm:$0xff]  ;;  %v54_v35 = vld [vmem:[#allocation5 + $0x40] sm:$0xff] }
 0x4e0   :  { %v1585_v4 = vperm.slane %v1577_v41, %v2115_v22  ;;  %v64_v41 = vld [vmem:[#allocation5 + $0x90] sm:$0xff] }
 0x4e1   :  { %v1589_v43 = vsel %vm183_vm8, %v1573_v40, %v1588_v39  ;;  %v1575_v44 = vsel %vm183_vm8, %v1574_v42, %v1556_v23  ;;  %v1586_v45 = vrot.slane %v1573_v40, 4  ;;  %1739 = vmatpush.msra.mxu2 %v56_v33  ;;  %v65_v40 = vld [vmem:[#allocation5 + $0x98] sm:$0xff]  ;;  %v63_v42 = vld [vmem:[#allocation5 + $0x88] sm:$0xff] }
 0x4e2   :  { %v1597_v46 = vperm.slane %v1589_v43, %v2115_v22  ;;  %v1604_v32 = vrot.slane %v1585_v4, 4  ;;  %v1581_v47 = vperm.slane %v1575_v44, %v2115_v22  ;;  %1767 = vmatpush.msra.mxu3 %v65_v40 }
 0x4e3   :  { %v1587_v26 = vsel %vm183_vm8, %v1586_v45, %v1567_v21  ;;  %1740 = vmatpush.msra.mxu2 %v55_v34 }
 0x4e4   :  { %v1605_v50 = vsel %vm183_vm8, %v1597_v46, %v1604_v32  ;;  %v1602_v2 = vrot.slane %v1597_v46, 4  ;;  %v1593_v51 = vperm.slane %v1587_v26, %v2115_v22  ;;  %v1600_v36 = vrot.slane %v1581_v47, 4  ;;  %v50_v22 = vld [vmem:[#allocation5 + $0x20] sm:$0xff]  ;;  %1768 = vmatpush.msra.mxu3 %v64_v41  ;;  %v61_v26 = vld [vmem:[#allocation5 + $0x78] sm:$0xff] }
 0x4e5   :  { %1626 = vrot.lane.b32.xlu2 %v1605_v50, %s2018_s25  ;;  %1659 = vmatpush.msra.mxu1 %v50_v22  ;;  %v62_v46 = vld [vmem:[#allocation5 + $0x80] sm:$0xff] }
 0x4e6   :  { %v1603_v52 = vsel %vm183_vm8, %v1602_v2, %v1585_v4  ;;  %v1598_v53 = vrot.slane %v1593_v51, 4  ;;  %v1601_v54 = vsel %vm183_vm8, %v1593_v51, %v1600_v36  ;;  %1741 = vmatpush.msra.mxu2 %v54_v35  ;;  %1769 = vmatpush.msra.mxu3 %v63_v42  ;;  %v1878_v36 = vld [vmem:[#allocation5 + $0xa2] ss:$0 sm:$0xff] }
 0x4e7   :  { %1618 = vrot.lane.b32.xlu0 %v1603_v52, %s2017_s24  ;;  %1610 = vrot.lane.b32.xlu1 %v1601_v54, %s2006_s18 }
 0x4e8   :  { %v1599_v56 = vsel %vm183_vm8, %v1598_v53, %v1581_v47  ;;  %1770 = vmatpush.msra.mxu3 %v62_v46 }
 0x4ea   :  { %1771 = vmatpush.msra.mxu3 %v61_v26 }
 0x531   :  { %v1617_v25 = vpop.permute.xlu2 %1616 }
 0x53f   :  { %v1627_v59 = vpop.permute.xlu2 %1626 }
 0x549   :  { %v1625_v3 = vpop.permute.xlu0 %1624 }
 0x54c   :  { %v1609_v48 = vpop.permute.xlu1 %1608 }
 0x54d   :  { %v1630_v0 = vsel %vm936_vm9, %v1545_v37, %v1609_v48 }
 0x54e   :  { %v1632_v6 = vsel %vm1077_vm11, %v1630_v0, %v1617_v25 }
 0x54f   :  { %v1635_v49 = vsel %vm1634_vm6, %v1632_v6, %v1625_v3 }
 0x550   :  { %1832 = vmatmul.msk.f32.vlgmr.msra.gmra.mxu1 %vm74_vm0, %v1635_v49 }
 0x559   :  { %v1619_v1 = vpop.permute.xlu0 %1618  ;;  %v1611_v13 = vpop.permute.xlu1 %1610 }
 0x55a   :  { %v1631_v58 = vsel %vm936_vm9, %v1599_v56, %v1611_v13  ;;  %v59_v13 = vld [vmem:[#allocation5 + $0x68] sm:$0xff] }
 0x55b   :  { %v1633_v14 = vsel %vm1077_vm11, %v1631_v58, %v1619_v1  ;;  %v60_v1 = vld [vmem:[#allocation5 + $0x70] sm:$0xff]  ;;  %v58_v58 = vld [vmem:[#allocation5 + $0x60] sm:$0xff] }
 0x55c   :  { %v1636_v60 = vsel %vm1634_vm6, %v1633_v14, %v1627_v59  ;;  %1772 = vmatpush.msra.mxu3 %v60_v1  ;;  %v1880_v59 = vld [vmem:[#allocation5 + $0xa6] ss:$0 sm:$0xff] }
 0x55d   :  { %1833 = vmatmul.msk.f32.gmra.mxu1 %vm74_vm0, %v1636_v60 }
 0x55e   :  { %1773 = vmatpush.msra.mxu3 %v59_v13 }
 0x560   :  { %1774 = vmatpush.msra.mxu3 %v58_v58 }
 0x5cd   :  { %v1661_v8 = vpop.f32.mrf.mxu1 }
 0x5ce   :  { %v1662_v9 = vadd.f32 %v1877_v7, %v1661_v8 }
 0x5d0   :  { %v2616_v5 = vadd.f32 %v1924_v15, %v1662_v9 }
 0x5d2   :  { %v1669_v55 = vsel %vm74_vm0, %v2616_v5, 0.0 }
 0x5d3   :  { %1670 = vadd.xlane.f32.xlu1 %v1669_v55  ;;  %v1881_v55 = vld [vmem:[#allocation5 + $0xa5] ss:$0 sm:$0xff] }
 0x5da   :  { %v1664_v17 = vpop.f32.mrf.mxu1 }
 0x5db   :  { %v1665_v18 = vadd.f32 %v1877_v7, %v1664_v17 }
 0x5dd   :  { %v2620_v62 = vadd.f32 %v1925_v12, %v1665_v18 }
 0x5df   :  { %v1672_v57 = vsel %vm74_vm0, %v2620_v62, 0.0 }
 0x5e0   :  { %1673 = vadd.xlane.f32.xlu0 %v1672_v57 }
 0x646   :  { %v1671_v11 = vpop.xlane.xlu1 %1670 }
 0x647   :  { %v1675_v28 = vmul.f32 %v1671_v11, %v2049_v10 }
 0x649   :  { %v1677_v23 = vsub.f32 %v2616_v5, %v1675_v28 }
 0x64b   :  { %v1679_v19 = vmul.f32 %v1677_v23, %v1677_v23 }
 0x64d   :  { %v1681_v29 = vsel %vm74_vm0, %v1679_v19, 0.0 }
 0x64e   :  { %1682 = vadd.xlane.f32.xlu2 %v1681_v29 }
 0x653   :  { %v1674_v30 = vpop.xlane.xlu0 %1673 }
 0x654   :  { %v1676_v24 = vmul.f32 %v1674_v30, %v2049_v10 }
 0x656   :  { %v1678_v31 = vsub.f32 %v2620_v62, %v1676_v24 }
 0x658   :  { %v1680_v16 = vmul.f32 %v1678_v31, %v1678_v31 }
 0x65a   :  { %v1684_v21 = vsel %vm74_vm0, %v1680_v16, 0.0 }
 0x65b   :  { %1685 = vadd.xlane.f32.xlu1 %v1684_v21 }
 0x6c1   :  { %v1683_v37 = vpop.xlane.xlu2 %1682 }
 0x6c2   :  { %v1687_v38 = vmul.f32 %v1683_v37, %v2049_v10 }
 0x6c4   :  { %v1689_v39 = vadd.f32 1e-05, %v1687_v38 }
 0x6c6   :  { %1920 = vrsqrt.f32 %v1689_v39  ;;  %vm1697_vm9 = vweird.f32 %v1689_v39 }
 0x6cc   :  { %v1921_v4 = vpop.eup %1920 }
 0x6cd   :  { %v1692_v44 = vmul.f32 %v1921_v4, %v1689_v39  ;;  %vm1698_vm8 = vweird.f32 %v1921_v4 }
 0x6ce   :  { %v1686_v43 = vpop.xlane.xlu1 %1685  ;;  %vm1699_vm11 = vmor %vm1697_vm9, %vm1698_vm8 }
 0x6cf   :  { %v1688_v45 = vmul.f32 %v1686_v43, %v2049_v10  ;;  %v1693_v32 = vmul.f32 %v1921_v4, %v1692_v44  ;;  %v1879_v10 = vld [vmem:[#allocation5 + $0xa3] ss:$0 sm:$0xff] }
 0x6d1   :  { %v1690_v47 = vadd.f32 1e-05, %v1688_v45  ;;  %v1694_v50 = vmul.f32 0.5, %v1693_v32 }
 0x6d3   :  { %1922 = vrsqrt.f32 %v1690_v47  ;;  %v1695_v2 = vsub.f32 1.5, %v1694_v50  ;;  %vm1707_vm10 = vweird.f32 %v1690_v47 }
 0x6d5   :  { %v1696_v51 = vmul.f32 %v1921_v4, %v1695_v2 }
 0x6d7   :  { %v1700_v53 = vsel %vm1699_vm11, %v1921_v4, %v1696_v51 }
 0x6d8   :  { %v1711_v54 = vmul.f32 %v1700_v53, %v1677_v23 }
 0x6d9   :  { %v1923_v52 = vpop.eup %1922 }
 0x6da   :  { %v1702_v56 = vmul.f32 %v1923_v52, %v1690_v47  ;;  %v1714_v61 = vmul.f32 %v1878_v36, %v1711_v54  ;;  %vm1708_vm7 = vweird.f32 %v1923_v52 }
 0x6db   :  { %vm1709_vm12 = vmor %vm1707_vm10, %vm1708_vm7 }
 0x6dc   :  { %v1703_v63 = vmul.f32 %v1923_v52, %v1702_v56  ;;  %v1717_v22 = vadd.f32 %v1879_v10, %v1714_v61 }
 0x6de   :  { %v1704_v20 = vmul.f32 0.5, %v1703_v63  ;;  %1834 = vmatmul.msk.f32.vlgmr.msra.gmra.mxu2 %vm74_vm0, %v1717_v22 }
 0x6e0   :  { %v1705_v48 = vsub.f32 1.5, %v1704_v20 }
 0x6e2   :  { %v1706_v25 = vmul.f32 %v1923_v52, %v1705_v48 }
 0x6e4   :  { %v1710_v0 = vsel %vm1709_vm12, %v1923_v52, %v1706_v25 }
 0x6e5   :  { %v1712_v3 = vmul.f32 %v1710_v0, %v1678_v31 }
 0x6e7   :  { %v1715_v6 = vmul.f32 %v1878_v36, %v1712_v3 }
 0x6e9   :  { %v1718_v49 = vadd.f32 %v1879_v10, %v1715_v6 }
 0x6eb   :  { %1835 = vmatmul.msk.f32.gmra.mxu2 %vm74_vm0, %v1718_v49 }
 0x761   :  { %v1743_v14 = vpop.f32.mrf.mxu2 }
 0x762   :  { %v1744_v60 = vadd.f32 %v1880_v59, %v1743_v14 }
 0x764   :  { %v1749_v7 = vmax.f32 %v1744_v60, 0.0 }
 0x766   :  { %1836 = vmatmul.msk.f32.vlgmr.msra.gmra.mxu3 %vm1752_vm13, %v1749_v7 }
 0x76e   :  { %v1746_v8 = vpop.f32.mrf.mxu2 }
 0x76f   :  { %v1747_v9 = vadd.f32 %v1880_v59, %v1746_v8 }
 0x771   :  { %v1750_v15 = vmax.f32 %v1747_v9, 0.0 }
 0x773   :  { %1837 = vmatmul.msk.f32.gmra.mxu3 %vm1752_vm13, %v1750_v15 }
 0x7e9   :  { %v1776_v17 = vpop.f32.mrf.mxu3 }
 0x7ea   :  { %v1777_v18 = vadd.f32 %v1881_v55, %v1776_v17 }
 0x7ec   :  { %v1782_v12 = vadd.f32 %v1777_v18, %v2616_v5 }
 0x7ee   :  { %1784 = vst.msk [vmem:[#allocation7] sm:$0xff] %vm74_vm0, %v1782_v12 }
 0x7f6   :  { %v1779_v57 = vpop.f32.mrf.mxu3 }
 0x7f7   :  { %v1780_v11 = vadd.f32 %v1881_v55, %v1779_v57 }
 0x7f9   :  { %v1783_v28 = vadd.f32 %v1780_v11, %v2620_v62 }
 0x7fb   :  { %1785 = vst.msk [vmem:[#allocation7 + $0x8] sm:$0xff] %vm74_vm0, %v1783_v28 }
 0x7fc   :  { %1798 = dma.vmem_to_hbm [thread:$0]  %s1791_s27, 256, %s1793_s30, [#allocation4], %s2005_s17, %s2005_s17, %s2006_s18  }
 0x7fd   :  { %2002 = dma.done.wait [#allocation4], 256  }
 0x7fe   :  { %2003 = vsyncadd [#allocation4], 4294967040 }
 0x7ff   :  { %1803 = vsyncpa [#allocation3], 1 }
 0x800   :  { %1804 = vsyncpa [#allocation6], 1 }
 0x801   :  { %1805 = vsyncpa [#allocation4], 1 }

</bundles_post_ra>
